<compile_context>
chip_gen: v6e
topology: v6e:2x2x1
jax: 0.10.0
libtpu: 0.0.40
codegen_flags: <defaults>
</compile_context>

<pallas_src>
import functools

import jax
import jax.numpy as jnp
from jax.experimental import pallas as pl
from jax.experimental.pallas import tpu as pltpu


def _round_up(x, m):
    return ((x + m - 1) // m) * m


def _vmem_limit_bytes():
    """Generation-aware scoped-VMEM request (v5e/v6e ~64 MiB, v7x ~48 MiB)."""
    try:
        cap = int(pltpu.get_tpu_info().vmem_capacity_bytes)
    except Exception:
        cap = 64 * 1024 * 1024          # conservative fallback (v7x-sized)
    return min(cap * 3 // 4, 64 * 1024 * 1024)


def _fits(tn, kc, d_aug, k_pad, budget):
    z_blk = 2 * tn * d_aug * 4                        # double-buffered row block
    e_blk = (1 if kc == k_pad else 2) * kc * d_aug * 4  # single-buffer if invariant
    temps = 3 * tn * kc * 4                           # score f32 + argmin i32 temps
    other = 4 * tn * 4                                # idx out block + min/arg scratch
    return z_blk + e_blk + temps + other <= budget


def _pick_tiles(d_aug, k_pad, budget):
    """Pick (row tile, K chunk): multiples of 128, K chunk divides k_pad."""
    kc_candidates = [k_pad] + [c for c in (4096, 2048, 1024, 512, 256, 128)
                               if c < k_pad and k_pad % c == 0]
    for tn in (1024, 512, 256, 128):
        for kc in kc_candidates:
            if _fits(tn, kc, d_aug, k_pad, budget):
                return tn, kc
    return 128, 128


def _vq_argmin_kernel(z_ref, e_ref, idx_ref, min_sc, arg_sc, *,
                      k_chunk, k_pad, use_bf16_scores):
    """One (row-tile, K-chunk) step of nearest-codebook search.

    z_ref  : (TN, D+1)      f32  [z | 1] rows
    e_ref  : (KC, D+1)      f32  [-2e | ||e||^2] codebook chunk (pad rows: 1e30)
    idx_ref: (1, TN/128, 128) i32  argmin codebook index per row (lane-dense)
    min_sc, arg_sc : (TN/128, 128) running min / argmin across K chunks
    """
    kb = pl.program_id(1)
    z = z_ref[...]
    e = e_ref[...]
    if use_bf16_scores:
        z = z.astype(jnp.bfloat16)
        e = e.astype(jnp.bfloat16)

    # score[r, k] = ||e_k||^2 - 2 z_r.e_k  (the row-constant ||z||^2 term
    # never changes the argmin, so it is dropped).  Single MXU pass.
    score = jax.lax.dot_general(
        z, e, (((1,), (1,)), ((), ())),
        preferred_element_type=jnp.float32)                  # (TN, KC)

    tn = score.shape[0]
    t = tn // 128
    s3 = score.reshape(t, 128, k_chunk)                      # lane-dense per-row view
    k_iota = (kb * k_chunk
              + jax.lax.broadcasted_iota(jnp.int32, (1, 1, k_chunk), 2))
    blk_min = jnp.min(s3, axis=-1, keepdims=True)            # (T, 128, 1)
    # First-occurrence tie break within the chunk (torch.argmin semantics).
    blk_arg = jnp.min(jnp.where(s3 == blk_min, k_iota, k_pad), axis=-1)
    blk_min = blk_min[..., 0]                                 # (T, 128)

    @pl.when(kb == 0)
    def _():
        min_sc[...] = blk_min
        arg_sc[...] = blk_arg

    @pl.when(kb > 0)
    def _():
        better = blk_min < min_sc[...]     # strict '<': earlier chunk wins ties
        arg_sc[...] = jnp.where(better, blk_arg, arg_sc[...])
        min_sc[...] = jnp.where(better, blk_min, min_sc[...])

    @pl.when(kb == pl.num_programs(1) - 1)
    def _():
        idx_ref[...] = arg_sc[...].reshape(1, t, 128)


@functools.partial(jax.jit,
                   static_argnames=("commitment_cost", "use_bf16_scores"))
def vector_quantizer_forward(z, embeddings, commitment_cost,
                             use_bf16_scores=False):
    """z: (B, C, H, W) float32 (NCHW, as in PyTorch). embeddings: (K, D)."""
    B, C, H, W = z.shape
    K, D = embeddings.shape
    assert C == D, "channel dim must equal embedding_dim"

    # NCHW -> NHWC -> (N, D).
    # TODO(synk): accept NHWC activations directly (or use allow_input_fusion)
    # to avoid this extra HBM round-trip of z before a memory-light kernel.
    z_flat = jnp.transpose(z, (0, 2, 3, 1)).reshape(-1, D).astype(jnp.float32)
    N = z_flat.shape[0]

    d_aug = D + 1
    K_pad = _round_up(K, 128)
    vmem_limit = _vmem_limit_bytes()
    tn_max, KC = _pick_tiles(d_aug, K_pad, vmem_limit - 8 * 1024 * 1024)
    TN = min(tn_max, _round_up(N, 128))
    N_pad = _round_up(N, TN)
    num_tiles = N_pad // TN
    num_k_chunks = K_pad // KC
    T = TN // 128

    # Augmented operands: score = [z | 1] @ [-2e | ||e||^2]^T.
    z_aug = jnp.concatenate([z_flat, jnp.ones((N, 1), jnp.float32)], axis=1)
    if N_pad != N:
        z_aug = jnp.pad(z_aug, ((0, N_pad - N), (0, 0)))

    e32 = embeddings.astype(jnp.float32)
    e2 = jnp.sum(e32 * e32, axis=1, keepdims=True)            # (K, 1)
    e_aug = jnp.concatenate([-2.0 * e32, e2], axis=1)         # (K, D+1)
    if K_pad != K:
        pad_rows = jnp.concatenate(
            [jnp.zeros((K_pad - K, D), jnp.float32),
             jnp.full((K_pad - K, 1), 1e30, jnp.float32)], axis=1)
        e_aug = jnp.concatenate([e_aug, pad_rows], axis=0)    # pads never win argmin

    kernel = functools.partial(_vq_argmin_kernel, k_chunk=KC, k_pad=K_pad,
                               use_bf16_scores=use_bf16_scores)

    # Grid-invariant codebook (single chunk): one pipeline buffer is enough.
    if num_k_chunks == 1:
        e_spec = pl.BlockSpec((KC, d_aug), lambda i, kb: (kb, 0),
                              pipeline_mode=pl.Buffered(1))
    else:
        e_spec = pl.BlockSpec((KC, d_aug), lambda i, kb: (kb, 0))

    idx_pad = pl.pallas_call(
        kernel,
        out_shape=jax.ShapeDtypeStruct((num_tiles, T, 128), jnp.int32),
        grid_spec=pltpu.PrefetchScalarGridSpec(
            num_scalar_prefetch=0,
            grid=(num_tiles, num_k_chunks),
            in_specs=[
                pl.BlockSpec((TN, d_aug), lambda i, kb: (i, 0)),   # [z | 1] rows
                e_spec,                                            # codebook chunk
            ],
            out_specs=pl.BlockSpec((1, T, 128), lambda i, kb: (i, 0, 0)),
            scratch_shapes=[pltpu.VMEM((T, 128), jnp.float32),     # running min
                            pltpu.VMEM((T, 128), jnp.int32)],      # running argmin
        ),
        compiler_params=pltpu.CompilerParams(
            dimension_semantics=("parallel", "arbitrary"),
            vmem_limit_bytes=vmem_limit,
        ),
    )(z_aug, e_aug)

    idx_flat = idx_pad.reshape(-1)[:N]

    # Small-D epilogue in XLA: a (rows, D<128) q store from the kernel would
    # be lane-sparse masked vst's; a plain gather + MSE here is cheap & exact.
    q_flat = jnp.take(e32, idx_flat, axis=0)                   # (N, D)
    diff = q_flat - z_flat
    mse = jnp.mean(diff * diff)
    # Forward value of q_latent_loss + beta * e_latent_loss (detach only
    # changes gradients).  TODO(synk): custom_vjp for the straight-through
    # estimator / codebook-vs-commitment gradient split if used in training.
    loss = (1.0 + jnp.float32(commitment_cost)) * mse

    quantized = jnp.transpose(q_flat.reshape(B, H, W, D), (0, 3, 1, 2))
    indices = idx_flat.reshape(B, H, W)
    return quantized, loss, indices


if __name__ == "__main__":
    # Small, module-consistent shapes: batch=2, embedding_dim=4, spatial=16.
    num_embeddings = 16
    embedding_dim = 4
    commitment_cost = 0.25
    B, H, W = 2, 16, 16

    key = jax.random.PRNGKey(0)
    kz, ke = jax.random.split(key)
    z = jax.random.normal(kz, (B, embedding_dim, H, W), dtype=jnp.float32)
    # nn.Embedding weight init: uniform(-1/K, 1/K), deterministic via PRNGKey.
    embeddings = jax.random.uniform(
        ke, (num_embeddings, embedding_dim), dtype=jnp.float32,
        minval=-1.0 / num_embeddings, maxval=1.0 / num_embeddings)

    quantized, loss, indices = vector_quantizer_forward(
        z, embeddings, commitment_cost)
    jax.block_until_ready((quantized, loss, indices))

    # Self-check against a plain-JAX reference (tolerant only of exact-tie
    # argmin flips, the one allowed divergence from torch.argmin).
    zf = jnp.transpose(z, (0, 2, 3, 1)).reshape(-1, embedding_dim)
    d_ref = (jnp.sum(zf ** 2, 1, keepdims=True) + jnp.sum(embeddings ** 2, 1)
             - 2.0 * zf @ embeddings.T)                              # (N, K)
    idx_k = indices.reshape(-1)
    assert bool(jnp.all((idx_k >= 0) & (idx_k < num_embeddings)))
    # 1) chosen entries achieve the minimum distance
    d_chosen = jnp.take_along_axis(d_ref, idx_k[:, None], axis=1)[:, 0]
    assert bool(jnp.all(d_chosen <= jnp.min(d_ref, axis=1) + 1e-5))
    # 2) quantized values are exactly the selected codebook rows, in NCHW
    q_ref = jnp.transpose(embeddings[idx_k].reshape(B, H, W, embedding_dim),
                          (0, 3, 1, 2))
    assert bool(jnp.allclose(quantized, q_ref, atol=1e-6))
    # 3) loss == (1 + commitment_cost) * MSE(quantized, z)
    loss_ref = (1.0 + commitment_cost) * jnp.mean((q_ref - z) ** 2)
    assert bool(jnp.allclose(loss, loss_ref, rtol=1e-5, atol=1e-7))
    assert indices.shape == (B, H, W) and indices.dtype == jnp.int32

    print("KERNEL_OK")
</pallas_src>

<mosaic_0001>
module attributes {stable_mosaic.version = 11 : i64} {
  func.func @_vq_argmin_kernel(%arg0: i32, %arg1: i32, %arg2: memref<512x5xf32, #tpu.memory_space<vmem>>, %arg3: memref<128x5xf32, #tpu.memory_space<vmem>>, %arg4: memref<1x4x128xi32, #tpu.memory_space<vmem>>, %arg5: memref<4x128xf32, #tpu.memory_space<vmem>>, %arg6: memref<4x128xi32, #tpu.memory_space<vmem>>) attributes {dimension_semantics = [#tpu.dimension_semantics<parallel>, #tpu.dimension_semantics<arbitrary>], iteration_bounds = array<i64: 1, 1>, scalar_prefetch = 0 : i64, scratch_operands = 2 : i64, tpu.core_type = #tpu.core_type<tc>, window_params = [{transform_indices = @transform_0, window_bounds = array<i64: 512, 5>}, {pipeline_mode = #tpu.pipeline_mode<synchronous>, transform_indices = @transform_1, window_bounds = array<i64: 128, 5>}, {transform_indices = @transform_2, window_bounds = array<i64: 1, 4, 128>}]} {
    %c0 = arith.constant 0 : index
    %c0_0 = arith.constant 0 : index
    %0 = vector.load %arg2[%c0, %c0_0] : memref<512x5xf32, #tpu.memory_space<vmem>>, vector<512x5xf32>
    %c0_1 = arith.constant 0 : index
    %c0_2 = arith.constant 0 : index
    %1 = vector.load %arg3[%c0_1, %c0_2] : memref<128x5xf32, #tpu.memory_space<vmem>>, vector<128x5xf32>
    %cst = arith.constant dense<0.000000e+00> : vector<512x128xf32>
    %2 = tpu.matmul %0, %1, %cst {dimension_numbers = #tpu.dot_dimension_numbers<[1], [1], [0], [0], [0, 0, 1, 0], [], []>} : vector<512x5xf32>, vector<128x5xf32>, vector<512x128xf32> -> vector<512x128xf32>
    %3 = vector.shape_cast %2 : vector<512x128xf32> to vector<4x128x128xf32>
    %c128_i32 = arith.constant 128 : i32
    %4 = arith.muli %arg1, %c128_i32 : i32
    %5 = tpu.iota {dimensions = array<i32: 2>} : vector<1x1x128xi32>
    %6 = vector.broadcast %4 : i32 to vector<1x1x128xi32>
    %7 = arith.addi %6, %5 : vector<1x1x128xi32>
    %cst_3 = arith.constant dense<0x7F800000> : vector<4x128xf32>
    %8 = vector.multi_reduction <minimumf>, %3, %cst_3 [2] : vector<4x128x128xf32> to vector<4x128xf32>
    %9 = vector.shape_cast %8 : vector<4x128xf32> to vector<4x128x1xf32>
    %10 = vector.broadcast %9 : vector<4x128x1xf32> to vector<4x128x128xf32>
    %11 = arith.cmpf oeq, %3, %10 : vector<4x128x128xf32>
    %c128_i32_4 = arith.constant 128 : i32
    %12 = vector.shape_cast %7 : vector<1x1x128xi32> to vector<1x1x128xi32>
    %13 = vector.broadcast %12 : vector<1x1x128xi32> to vector<4x128x128xi32>
    %14 = vector.broadcast %c128_i32_4 : i32 to vector<4x128x128xi32>
    %15 = arith.select %11, %13, %14 : vector<4x128x128xi1>, vector<4x128x128xi32>
    %cst_5 = arith.constant dense<2147483647> : vector<4x128xi32>
    %16 = vector.multi_reduction <minsi>, %15, %cst_5 [2] : vector<4x128x128xi32> to vector<4x128xi32>
    %17 = vector.shape_cast %9 : vector<4x128x1xf32> to vector<4x128xf32>
    %c0_i32 = arith.constant 0 : i32
    %18 = arith.cmpi eq, %arg1, %c0_i32 : i32
    %19 = arith.extui %18 : i1 to i32
    %c0_i32_6 = arith.constant 0 : i32
    %20 = arith.cmpi ne, %19, %c0_i32_6 : i32
    scf.if %20 {
      %c0_11 = arith.constant 0 : index
      %c0_12 = arith.constant 0 : index
      %27 = vector.load %arg5[%c0_11, %c0_12] : memref<4x128xf32, #tpu.memory_space<vmem>>, vector<4x128xf32>
      tpu.vector_store %arg5[%c0_11, %c0_12], %17 {strides = array<i32>} : memref<4x128xf32, #tpu.memory_space<vmem>>, vector<4x128xf32>,
      %c0_13 = arith.constant 0 : index
      %c0_14 = arith.constant 0 : index
      %28 = vector.load %arg6[%c0_13, %c0_14] : memref<4x128xi32, #tpu.memory_space<vmem>>, vector<4x128xi32>
      tpu.vector_store %arg6[%c0_13, %c0_14], %16 {strides = array<i32>} : memref<4x128xi32, #tpu.memory_space<vmem>>, vector<4x128xi32>,
    } else {
    }
    %c0_i32_7 = arith.constant 0 : i32
    %21 = arith.cmpi sgt, %arg1, %c0_i32_7 : i32
    %22 = arith.extui %21 : i1 to i32
    %c0_i32_8 = arith.constant 0 : i32
    %23 = arith.cmpi ne, %22, %c0_i32_8 : i32
    scf.if %23 {
      %c0_11 = arith.constant 0 : index
      %c0_12 = arith.constant 0 : index
      %27 = vector.load %arg5[%c0_11, %c0_12] : memref<4x128xf32, #tpu.memory_space<vmem>>, vector<4x128xf32>
      %28 = arith.cmpf olt, %17, %27 : vector<4x128xf32>
      %c0_13 = arith.constant 0 : index
      %c0_14 = arith.constant 0 : index
      %29 = vector.load %arg6[%c0_13, %c0_14] : memref<4x128xi32, #tpu.memory_space<vmem>>, vector<4x128xi32>
      %30 = arith.select %28, %16, %29 : vector<4x128xi1>, vector<4x128xi32>
      %c0_15 = arith.constant 0 : index
      %c0_16 = arith.constant 0 : index
      %31 = vector.load %arg6[%c0_15, %c0_16] : memref<4x128xi32, #tpu.memory_space<vmem>>, vector<4x128xi32>
      tpu.vector_store %arg6[%c0_15, %c0_16], %30 {strides = array<i32>} : memref<4x128xi32, #tpu.memory_space<vmem>>, vector<4x128xi32>,
      %c0_17 = arith.constant 0 : index
      %c0_18 = arith.constant 0 : index
      %32 = vector.load %arg5[%c0_17, %c0_18] : memref<4x128xf32, #tpu.memory_space<vmem>>, vector<4x128xf32>
      %33 = arith.select %28, %17, %32 : vector<4x128xi1>, vector<4x128xf32>
      %c0_19 = arith.constant 0 : index
      %c0_20 = arith.constant 0 : index
      %34 = vector.load %arg5[%c0_19, %c0_20] : memref<4x128xf32, #tpu.memory_space<vmem>>, vector<4x128xf32>
      tpu.vector_store %arg5[%c0_19, %c0_20], %33 {strides = array<i32>} : memref<4x128xf32, #tpu.memory_space<vmem>>, vector<4x128xf32>,
    } else {
    }
    %c0_i32_9 = arith.constant 0 : i32
    %24 = arith.cmpi eq, %arg1, %c0_i32_9 : i32
    %25 = arith.extui %24 : i1 to i32
    %c0_i32_10 = arith.constant 0 : i32
    %26 = arith.cmpi ne, %25, %c0_i32_10 : i32
    scf.if %26 {
      %c0_11 = arith.constant 0 : index
      %c0_12 = arith.constant 0 : index
      %27 = vector.load %arg6[%c0_11, %c0_12] : memref<4x128xi32, #tpu.memory_space<vmem>>, vector<4x128xi32>
      %28 = vector.shape_cast %27 : vector<4x128xi32> to vector<1x4x128xi32>
      %c0_13 = arith.constant 0 : index
      %c0_14 = arith.constant 0 : index
      %c0_15 = arith.constant 0 : index
      %29 = vector.load %arg4[%c0_13, %c0_14, %c0_15] : memref<1x4x128xi32, #tpu.memory_space<vmem>>, vector<1x4x128xi32>
      tpu.vector_store %arg4[%c0_13, %c0_14, %c0_15], %28 {strides = array<i32>} : memref<1x4x128xi32, #tpu.memory_space<vmem>>, vector<1x4x128xi32>,
    } else {
    }
    return
  }
  func.func @transform_0(%arg0: i32, %arg1: i32) -> (i32, i32) {
    %c0_i32 = arith.constant 0 : i32
    %c0_i32_0 = arith.constant 0 : i32
    return %arg0, %c0_i32 : i32, i32
  }
  func.func @transform_1(%arg0: i32, %arg1: i32) -> (i32, i32) {
    %c0_i32 = arith.constant 0 : i32
    %c0_i32_0 = arith.constant 0 : i32
    return %arg1, %c0_i32 : i32, i32
  }
  func.func @transform_2(%arg0: i32, %arg1: i32) -> (i32, i32, i32) {
    %c0_i32 = arith.constant 0 : i32
    %c0_i32_0 = arith.constant 0 : i32
    %c0_i32_1 = arith.constant 0 : i32
    return %arg0, %c0_i32, %c0_i32_0 : i32, i32, i32
  }
}

</mosaic_0001>

<bundles_post_ra>
// kernel: vector_quantizer_forward.1
= control target key start
LH: loop header
LB: loop body
LE: loop exit
PB: predicated region body
PF: predicated region fallthrough
CT: control target
= control target key end

     0   :  { %vm91_vm0 = vcmask 39936   ;;  %s7003_s1 = inlined_call_operand.vmem [shape: f32[128,5], index: 1, kind: input, shape index: {}]   ;;  %s7004_s0 = inlined_call_operand.vmem [shape: f32[512,5], index: 0, kind: input, shape index: {}]   ;;  %s7005_s2 = inlined_call_operand.vmem [shape: s32[1,4,128], index: 2, kind: output, shape index: {}]  }
   0x1   :  { %v90_v0 = vld [vmem:[%s7003_s1 + $0x78] sm:$0xff]  ;;  %v89_v1 = vld [vmem:[%s7003_s1 + $0x70] sm:$0xff]  ;;  %v88_v2 = vld [vmem:[%s7003_s1 + $0x68] sm:$0xff] }
   0x2   :  { %5040 = vmatprep.subr.msk.mxu0 %vm91_vm0, %v90_v0  ;;  %5168 = vmatprep.subr.msk.mxu1 %vm91_vm0, %v90_v0  ;;  %v11_v3 = vld [vmem:[%s7004_s0] sm:$0xff]  ;;  %v86_v6 = vld [vmem:[%s7003_s1 + $0x58] sm:$0xff]  ;;  %v85_v7 = vld [vmem:[%s7003_s1 + $0x50] sm:$0xff] }
   0x3   :  { %5041 = vmatpush3.xpose.msk.msra.mxu0 %vm91_vm0, %v90_v0  ;;  %5184 = vmatpush3.xpose.msk.msra.mxu1 %vm91_vm0, %v90_v0  ;;  %v43_v4 = vld [vmem:[%s7004_s0 + $0x100] sm:$0xff]  ;;  %v84_v8 = vld [vmem:[%s7003_s1 + $0x48] sm:$0xff]  ;;  %v82_v10 = vld [vmem:[%s7003_s1 + $0x38] sm:$0xff] }
   0x4   :  { %5042 = vmatprep.subr.msk.mxu0 %vm91_vm0, %v89_v1  ;;  %5169 = vmatprep.subr.msk.mxu1 %vm91_vm0, %v89_v1  ;;  %v87_v5 = vld [vmem:[%s7003_s1 + $0x60] sm:$0xff]  ;;  %v81_v11 = vld [vmem:[%s7003_s1 + $0x30] sm:$0xff]  ;;  %v80_v12 = vld [vmem:[%s7003_s1 + $0x28] sm:$0xff] }
   0x5   :  { %5072 = vmatprep.mubr.msk.f32.mxu0 %vm91_vm0, %v11_v3  ;;  %5120 = vmatprep.mubr.msk.f32.mxu1 %vm91_vm0, %v43_v4  ;;  %v83_v9 = vld [vmem:[%s7003_s1 + $0x40] sm:$0xff]  ;;  %v78_v14 = vld [vmem:[%s7003_s1 + $0x18] sm:$0xff]  ;;  %v77_v15 = vld [vmem:[%s7003_s1 + $0x10] sm:$0xff] }
   0x6   :  { %v79_v13 = vld [vmem:[%s7003_s1 + $0x20] sm:$0xff]  ;;  %v76_v16 = vld [vmem:[%s7003_s1 + $0x8] sm:$0xff]  ;;  %v13_v20 = vld [vmem:[%s7004_s0 + $0x10] sm:$0xff] }
   0x7   :  { %5043 = vmatpush3.xpose.msk.msra.mxu0 %vm91_vm0, %v89_v1  ;;  %5185 = vmatpush3.xpose.msk.msra.mxu1 %vm91_vm0, %v89_v1  ;;  %v75_v17 = vld [vmem:[%s7003_s1] sm:$0xff]  ;;  %v12_v18 = vld [vmem:[%s7004_s0 + $0x8] sm:$0xff]  ;;  %v45_v21 = vld [vmem:[%s7004_s0 + $0x110] sm:$0xff] }
   0x8   :  { %5044 = vmatprep.subr.msk.mxu0 %vm91_vm0, %v88_v2  ;;  %5170 = vmatprep.subr.msk.mxu1 %vm91_vm0, %v88_v2  ;;  %v44_v19 = vld [vmem:[%s7004_s0 + $0x108] sm:$0xff]  ;;  %v14_v22 = vld [vmem:[%s7004_s0 + $0x18] sm:$0xff]  ;;  %v15_v24 = vld [vmem:[%s7004_s0 + $0x20] sm:$0xff] }
   0x9   :  { %v46_v23 = vld [vmem:[%s7004_s0 + $0x118] sm:$0xff]  ;;  %v47_v25 = vld [vmem:[%s7004_s0 + $0x120] sm:$0xff]  ;;  %v16_v26 = vld [vmem:[%s7004_s0 + $0x28] sm:$0xff] }
   0xa   :  { %v48_v27 = vld [vmem:[%s7004_s0 + $0x128] sm:$0xff]  ;;  %v17_v28 = vld [vmem:[%s7004_s0 + $0x30] sm:$0xff]  ;;  %v18_v30 = vld [vmem:[%s7004_s0 + $0x38] sm:$0xff] }
   0xb   :  { %5045 = vmatpush3.xpose.msk.msra.mxu0 %vm91_vm0, %v88_v2  ;;  %5186 = vmatpush3.xpose.msk.msra.mxu1 %vm91_vm0, %v88_v2  ;;  %v49_v29 = vld [vmem:[%s7004_s0 + $0x130] sm:$0xff]  ;;  %v50_v31 = vld [vmem:[%s7004_s0 + $0x138] sm:$0xff]  ;;  %v19_v32 = vld [vmem:[%s7004_s0 + $0x40] sm:$0xff] }
   0xc   :  { %5046 = vmatprep.subr.msk.mxu0 %vm91_vm0, %v87_v5  ;;  %5171 = vmatprep.subr.msk.mxu1 %vm91_vm0, %v87_v5  ;;  %v51_v33 = vld [vmem:[%s7004_s0 + $0x140] sm:$0xff]  ;;  %v20_v34 = vld [vmem:[%s7004_s0 + $0x48] sm:$0xff]  ;;  %v21_v36 = vld [vmem:[%s7004_s0 + $0x50] sm:$0xff] }
   0xd   :  { %v52_v35 = vld [vmem:[%s7004_s0 + $0x148] sm:$0xff]  ;;  %v53_v37 = vld [vmem:[%s7004_s0 + $0x150] sm:$0xff]  ;;  %v22_v38 = vld [vmem:[%s7004_s0 + $0x58] sm:$0xff] }
   0xe   :  { %v54_v39 = vld [vmem:[%s7004_s0 + $0x158] sm:$0xff]  ;;  %v23_v40 = vld [vmem:[%s7004_s0 + $0x60] sm:$0xff]  ;;  %v24_v42 = vld [vmem:[%s7004_s0 + $0x68] sm:$0xff] }
   0xf   :  { %5047 = vmatpush3.xpose.msk.msra.mxu0 %vm91_vm0, %v87_v5  ;;  %5187 = vmatpush3.xpose.msk.msra.mxu1 %vm91_vm0, %v87_v5  ;;  %v55_v41 = vld [vmem:[%s7004_s0 + $0x160] sm:$0xff]  ;;  %v56_v43 = vld [vmem:[%s7004_s0 + $0x168] sm:$0xff]  ;;  %v25_v44 = vld [vmem:[%s7004_s0 + $0x70] sm:$0xff] }
  0x10   :  { %5048 = vmatprep.subr.msk.mxu0 %vm91_vm0, %v86_v6  ;;  %5172 = vmatprep.subr.msk.mxu1 %vm91_vm0, %v86_v6  ;;  %v57_v45 = vld [vmem:[%s7004_s0 + $0x170] sm:$0xff]  ;;  %v26_v46 = vld [vmem:[%s7004_s0 + $0x78] sm:$0xff]  ;;  %v27_v48 = vld [vmem:[%s7004_s0 + $0x80] sm:$0xff] }
  0x11   :  { %v58_v47 = vld [vmem:[%s7004_s0 + $0x178] sm:$0xff]  ;;  %v59_v49 = vld [vmem:[%s7004_s0 + $0x180] sm:$0xff]  ;;  %v28_v50 = vld [vmem:[%s7004_s0 + $0x88] sm:$0xff] }
  0x12   :  { %v60_v51 = vld [vmem:[%s7004_s0 + $0x188] sm:$0xff]  ;;  %v29_v52 = vld [vmem:[%s7004_s0 + $0x90] sm:$0xff]  ;;  %v30_v54 = vld [vmem:[%s7004_s0 + $0x98] sm:$0xff] }
  0x13   :  { %5049 = vmatpush3.xpose.msk.msra.mxu0 %vm91_vm0, %v86_v6  ;;  %5188 = vmatpush3.xpose.msk.msra.mxu1 %vm91_vm0, %v86_v6  ;;  %v61_v53 = vld [vmem:[%s7004_s0 + $0x190] sm:$0xff]  ;;  %v62_v55 = vld [vmem:[%s7004_s0 + $0x198] sm:$0xff]  ;;  %v31_v56 = vld [vmem:[%s7004_s0 + $0xa0] sm:$0xff] }
  0x14   :  { %5050 = vmatprep.subr.msk.mxu0 %vm91_vm0, %v85_v7  ;;  %5173 = vmatprep.subr.msk.mxu1 %vm91_vm0, %v85_v7  ;;  %v63_v57 = vld [vmem:[%s7004_s0 + $0x1a0] sm:$0xff]  ;;  %v32_v58 = vld [vmem:[%s7004_s0 + $0xa8] sm:$0xff]  ;;  %v33_v60 = vld [vmem:[%s7004_s0 + $0xb0] sm:$0xff] }
  0x15   :  { %v64_v59 = vld [vmem:[%s7004_s0 + $0x1a8] sm:$0xff]  ;;  %v65_v61 = vld [vmem:[%s7004_s0 + $0x1b0] sm:$0xff]  ;;  %v34_v62 = vld [vmem:[%s7004_s0 + $0xb8] sm:$0xff] }
  0x16   :  { %v66_v63 = vld [vmem:[%s7004_s0 + $0x1b8] sm:$0xff]  ;;  %v35_v0 = vld [vmem:[%s7004_s0 + $0xc0] sm:$0xff]  ;;  %v36_v2 = vld [vmem:[%s7004_s0 + $0xc8] sm:$0xff] }
  0x17   :  { %5051 = vmatpush3.xpose.msk.msra.mxu0 %vm91_vm0, %v85_v7  ;;  %5189 = vmatpush3.xpose.msk.msra.mxu1 %vm91_vm0, %v85_v7  ;;  %v67_v1 = vld [vmem:[%s7004_s0 + $0x1c0] sm:$0xff]  ;;  %v68_v3 = vld [vmem:[%s7004_s0 + $0x1c8] sm:$0xff]  ;;  %v37_v4 = vld [vmem:[%s7004_s0 + $0xd0] sm:$0xff] }
  0x18   :  { %5052 = vmatprep.subr.msk.mxu0 %vm91_vm0, %v84_v8  ;;  %5174 = vmatprep.subr.msk.mxu1 %vm91_vm0, %v84_v8  ;;  %v69_v5 = vld [vmem:[%s7004_s0 + $0x1d0] sm:$0xff]  ;;  %v38_v6 = vld [vmem:[%s7004_s0 + $0xd8] sm:$0xff] }
  0x19   :  { %v70_v7 = vld [vmem:[%s7004_s0 + $0x1d8] sm:$0xff] }
  0x1b   :  { %5053 = vmatpush3.xpose.msk.msra.mxu0 %vm91_vm0, %v84_v8  ;;  %5190 = vmatpush3.xpose.msk.msra.mxu1 %vm91_vm0, %v84_v8  ;;  %v39_v8 = vld [vmem:[%s7004_s0 + $0xe0] sm:$0xff] }
  0x1c   :  { %5054 = vmatprep.subr.msk.mxu0 %vm91_vm0, %v83_v9  ;;  %5175 = vmatprep.subr.msk.mxu1 %vm91_vm0, %v83_v9 }
  0x1f   :  { %5055 = vmatpush3.xpose.msk.msra.mxu0 %vm91_vm0, %v83_v9  ;;  %5191 = vmatpush3.xpose.msk.msra.mxu1 %vm91_vm0, %v83_v9  ;;  %v71_v9 = vld [vmem:[%s7004_s0 + $0x1e0] sm:$0xff] }
  0x20   :  { %5056 = vmatprep.subr.msk.mxu0 %vm91_vm0, %v82_v10  ;;  %5176 = vmatprep.subr.msk.mxu1 %vm91_vm0, %v82_v10 }
  0x23   :  { %5057 = vmatpush3.xpose.msk.msra.mxu0 %vm91_vm0, %v82_v10  ;;  %5192 = vmatpush3.xpose.msk.msra.mxu1 %vm91_vm0, %v82_v10  ;;  %v40_v10 = vld [vmem:[%s7004_s0 + $0xe8] sm:$0xff] }
  0x24   :  { %5058 = vmatprep.subr.msk.mxu0 %vm91_vm0, %v81_v11  ;;  %5177 = vmatprep.subr.msk.mxu1 %vm91_vm0, %v81_v11 }
  0x27   :  { %5059 = vmatpush3.xpose.msk.msra.mxu0 %vm91_vm0, %v81_v11  ;;  %5193 = vmatpush3.xpose.msk.msra.mxu1 %vm91_vm0, %v81_v11  ;;  %v72_v11 = vld [vmem:[%s7004_s0 + $0x1e8] sm:$0xff] }
  0x28   :  { %5060 = vmatprep.subr.msk.mxu0 %vm91_vm0, %v80_v12  ;;  %5178 = vmatprep.subr.msk.mxu1 %vm91_vm0, %v80_v12 }
  0x2b   :  { %5061 = vmatpush3.xpose.msk.msra.mxu0 %vm91_vm0, %v80_v12  ;;  %5194 = vmatpush3.xpose.msk.msra.mxu1 %vm91_vm0, %v80_v12  ;;  %v41_v12 = vld [vmem:[%s7004_s0 + $0xf0] sm:$0xff] }
  0x2c   :  { %5062 = vmatprep.subr.msk.mxu0 %vm91_vm0, %v79_v13  ;;  %5179 = vmatprep.subr.msk.mxu1 %vm91_vm0, %v79_v13 }
  0x2f   :  { %5063 = vmatpush3.xpose.msk.msra.mxu0 %vm91_vm0, %v79_v13  ;;  %5195 = vmatpush3.xpose.msk.msra.mxu1 %vm91_vm0, %v79_v13  ;;  %v73_v13 = vld [vmem:[%s7004_s0 + $0x1f0] sm:$0xff] }
  0x30   :  { %5064 = vmatprep.subr.msk.mxu0 %vm91_vm0, %v78_v14  ;;  %5180 = vmatprep.subr.msk.mxu1 %vm91_vm0, %v78_v14 }
  0x33   :  { %5065 = vmatpush3.xpose.msk.msra.mxu0 %vm91_vm0, %v78_v14  ;;  %5196 = vmatpush3.xpose.msk.msra.mxu1 %vm91_vm0, %v78_v14  ;;  %v42_v14 = vld [vmem:[%s7004_s0 + $0xf8] sm:$0xff] }
  0x34   :  { %5066 = vmatprep.subr.msk.mxu0 %vm91_vm0, %v77_v15  ;;  %5181 = vmatprep.subr.msk.mxu1 %vm91_vm0, %v77_v15 }
  0x37   :  { %5067 = vmatpush3.xpose.msk.msra.mxu0 %vm91_vm0, %v77_v15  ;;  %5197 = vmatpush3.xpose.msk.msra.mxu1 %vm91_vm0, %v77_v15  ;;  %v74_v15 = vld [vmem:[%s7004_s0 + $0x1f8] sm:$0xff] }
  0x38   :  { %5068 = vmatprep.subr.msk.mxu0 %vm91_vm0, %v76_v16  ;;  %5182 = vmatprep.subr.msk.mxu1 %vm91_vm0, %v76_v16 }
  0x3b   :  { %5069 = vmatpush3.xpose.msk.msra.mxu0 %vm91_vm0, %v76_v16  ;;  %5198 = vmatpush3.xpose.msk.msra.mxu1 %vm91_vm0, %v76_v16 }
  0x3c   :  { %5070 = vmatprep.subr.msk.mxu0 %vm91_vm0, %v75_v17  ;;  %5183 = vmatprep.subr.msk.mxu1 %vm91_vm0, %v75_v17 }
  0x3f   :  { %5071 = vmatpush3.xpose.msk.msra.mxu0 %vm91_vm0, %v75_v17  ;;  %5199 = vmatpush3.xpose.msk.msra.mxu1 %vm91_vm0, %v75_v17 }
  0x42   :  { %5073 = vmatmul.mubr.msk.f32.vlgmr.msra.gmra.mxu0 %vm91_vm0, %v12_v18  ;;  %5121 = vmatmul.mubr.msk.f32.vlgmr.msra.gmra.mxu1 %vm91_vm0, %v44_v19 }
  0x43   :  { %5075 = vmatprep.mubr.msk.f32.mxu0 %vm91_vm0, %v13_v20  ;;  %5123 = vmatprep.mubr.msk.f32.mxu1 %vm91_vm0, %v45_v21 }
  0x46   :  { %5076 = vmatmul.mubr.msk.f32.gmra.mxu0 %vm91_vm0, %v14_v22  ;;  %5124 = vmatmul.mubr.msk.f32.gmra.mxu1 %vm91_vm0, %v46_v23 }
  0x47   :  { %5078 = vmatprep.mubr.msk.f32.mxu0 %vm91_vm0, %v15_v24  ;;  %5126 = vmatprep.mubr.msk.f32.mxu1 %vm91_vm0, %v47_v25 }
  0x4a   :  { %5079 = vmatmul.mubr.msk.f32.gmra.mxu0 %vm91_vm0, %v16_v26  ;;  %5127 = vmatmul.mubr.msk.f32.gmra.mxu1 %vm91_vm0, %v48_v27 }
  0x4b   :  { %5081 = vmatprep.mubr.msk.f32.mxu0 %vm91_vm0, %v17_v28  ;;  %5129 = vmatprep.mubr.msk.f32.mxu1 %vm91_vm0, %v49_v29 }
  0x4e   :  { %5082 = vmatmul.mubr.msk.f32.gmra.mxu0 %vm91_vm0, %v18_v30  ;;  %5130 = vmatmul.mubr.msk.f32.gmra.mxu1 %vm91_vm0, %v50_v31 }
  0x4f   :  { %5084 = vmatprep.mubr.msk.f32.mxu0 %vm91_vm0, %v19_v32  ;;  %5132 = vmatprep.mubr.msk.f32.mxu1 %vm91_vm0, %v51_v33 }
  0x52   :  { %5085 = vmatmul.mubr.msk.f32.gmra.mxu0 %vm91_vm0, %v20_v34  ;;  %5133 = vmatmul.mubr.msk.f32.gmra.mxu1 %vm91_vm0, %v52_v35 }
  0x53   :  { %5087 = vmatprep.mubr.msk.f32.mxu0 %vm91_vm0, %v21_v36  ;;  %5135 = vmatprep.mubr.msk.f32.mxu1 %vm91_vm0, %v53_v37 }
  0x56   :  { %5088 = vmatmul.mubr.msk.f32.gmra.mxu0 %vm91_vm0, %v22_v38  ;;  %5136 = vmatmul.mubr.msk.f32.gmra.mxu1 %vm91_vm0, %v54_v39 }
  0x57   :  { %5090 = vmatprep.mubr.msk.f32.mxu0 %vm91_vm0, %v23_v40  ;;  %5138 = vmatprep.mubr.msk.f32.mxu1 %vm91_vm0, %v55_v41 }
  0x5a   :  { %5091 = vmatmul.mubr.msk.f32.gmra.mxu0 %vm91_vm0, %v24_v42  ;;  %5139 = vmatmul.mubr.msk.f32.gmra.mxu1 %vm91_vm0, %v56_v43 }
  0x5b   :  { %5093 = vmatprep.mubr.msk.f32.mxu0 %vm91_vm0, %v25_v44  ;;  %5141 = vmatprep.mubr.msk.f32.mxu1 %vm91_vm0, %v57_v45 }
  0x5e   :  { %5094 = vmatmul.mubr.msk.f32.gmra.mxu0 %vm91_vm0, %v26_v46  ;;  %5142 = vmatmul.mubr.msk.f32.gmra.mxu1 %vm91_vm0, %v58_v47 }
  0x5f   :  { %5096 = vmatprep.mubr.msk.f32.mxu0 %vm91_vm0, %v27_v48  ;;  %5144 = vmatprep.mubr.msk.f32.mxu1 %vm91_vm0, %v59_v49 }
  0x62   :  { %5097 = vmatmul.mubr.msk.f32.gmra.mxu0 %vm91_vm0, %v28_v50  ;;  %5145 = vmatmul.mubr.msk.f32.gmra.mxu1 %vm91_vm0, %v60_v51 }
  0x63   :  { %5099 = vmatprep.mubr.msk.f32.mxu0 %vm91_vm0, %v29_v52  ;;  %5147 = vmatprep.mubr.msk.f32.mxu1 %vm91_vm0, %v61_v53 }
  0x66   :  { %5100 = vmatmul.mubr.msk.f32.gmra.mxu0 %vm91_vm0, %v30_v54  ;;  %5148 = vmatmul.mubr.msk.f32.gmra.mxu1 %vm91_vm0, %v62_v55 }
  0x67   :  { %5102 = vmatprep.mubr.msk.f32.mxu0 %vm91_vm0, %v31_v56  ;;  %5150 = vmatprep.mubr.msk.f32.mxu1 %vm91_vm0, %v63_v57 }
  0x6a   :  { %5103 = vmatmul.mubr.msk.f32.gmra.mxu0 %vm91_vm0, %v32_v58  ;;  %5151 = vmatmul.mubr.msk.f32.gmra.mxu1 %vm91_vm0, %v64_v59 }
  0x6b   :  { %5105 = vmatprep.mubr.msk.f32.mxu0 %vm91_vm0, %v33_v60  ;;  %5153 = vmatprep.mubr.msk.f32.mxu1 %vm91_vm0, %v65_v61 }
  0x6e   :  { %5106 = vmatmul.mubr.msk.f32.gmra.mxu0 %vm91_vm0, %v34_v62  ;;  %5154 = vmatmul.mubr.msk.f32.gmra.mxu1 %vm91_vm0, %v66_v63 }
  0x6f   :  { %5108 = vmatprep.mubr.msk.f32.mxu0 %vm91_vm0, %v35_v0  ;;  %5156 = vmatprep.mubr.msk.f32.mxu1 %vm91_vm0, %v67_v1 }
  0x72   :  { %5109 = vmatmul.mubr.msk.f32.gmra.mxu0 %vm91_vm0, %v36_v2  ;;  %5157 = vmatmul.mubr.msk.f32.gmra.mxu1 %vm91_vm0, %v68_v3 }
  0x73   :  { %5111 = vmatprep.mubr.msk.f32.mxu0 %vm91_vm0, %v37_v4  ;;  %5159 = vmatprep.mubr.msk.f32.mxu1 %vm91_vm0, %v69_v5 }
  0x76   :  { %5112 = vmatmul.mubr.msk.f32.gmra.mxu0 %vm91_vm0, %v38_v6  ;;  %5160 = vmatmul.mubr.msk.f32.gmra.mxu1 %vm91_vm0, %v70_v7 }
  0x77   :  { %5114 = vmatprep.mubr.msk.f32.mxu0 %vm91_vm0, %v39_v8  ;;  %5162 = vmatprep.mubr.msk.f32.mxu1 %vm91_vm0, %v71_v9 }
  0x7a   :  { %5115 = vmatmul.mubr.msk.f32.gmra.mxu0 %vm91_vm0, %v40_v10  ;;  %5163 = vmatmul.mubr.msk.f32.gmra.mxu1 %vm91_vm0, %v72_v11 }
  0x7b   :  { %5117 = vmatprep.mubr.msk.f32.mxu0 %vm91_vm0, %v41_v12  ;;  %5165 = vmatprep.mubr.msk.f32.mxu1 %vm91_vm0, %v73_v13 }
  0x7e   :  { %5118 = vmatmul.mubr.msk.f32.gmra.mxu0 %vm91_vm0, %v42_v14  ;;  %5166 = vmatmul.mubr.msk.f32.gmra.mxu1 %vm91_vm0, %v74_v15 }
 0x102   :  { %v5583_v16 = vpop.f32.mrf.mxu0  ;;  %v5585_v17 = vpop.f32.mrf.mxu1 }
 0x103   :  { %788 = vmin.xlane.f32.xlu1 %v5585_v17  ;;  %724 = vmin.xlane.f32.xlu0 %v5583_v16 }
 0x104   :  { %v5589_v18 = vpop.f32.mrf.mxu0  ;;  %v5593_v20 = vpop.f32.mrf.mxu1 }
 0x106   :  { %v5591_v19 = vpop.f32.mrf.mxu0  ;;  %v5597_v21 = vpop.f32.mrf.mxu1 }
 0x107   :  { %722 = vmin.xlane.f32.xlu0 %v5589_v18  ;;  %728 = vmin.xlane.f32.xlu1 %v5591_v19 }
 0x108   :  { %v5599_v22 = vpop.f32.mrf.mxu0  ;;  %v5603_v23 = vpop.f32.mrf.mxu1 }
 0x10a   :  { %v5605_v24 = vpop.f32.mrf.mxu0  ;;  %v5611_v26 = vpop.f32.mrf.mxu1 }
 0x10b   :  { %786 = vmin.xlane.f32.xlu0 %v5593_v20  ;;  %792 = vmin.xlane.f32.xlu1 %v5597_v21 }
 0x10c   :  { %v5609_v25 = vpop.f32.mrf.mxu0  ;;  %v5615_v27 = vpop.f32.mrf.mxu1 }
 0x10e   :  { %v5617_v28 = vpop.f32.mrf.mxu0  ;;  %v5623_v30 = vpop.f32.mrf.mxu1 }
 0x10f   :  { %790 = vmin.xlane.f32.xlu0 %v5603_v23  ;;  %726 = vmin.xlane.f32.xlu1 %v5599_v22 }
 0x110   :  { %v5621_v29 = vpop.f32.mrf.mxu0  ;;  %v5627_v31 = vpop.f32.mrf.mxu1 }
 0x112   :  { %v5629_v32 = vpop.f32.mrf.mxu0  ;;  %v5635_v34 = vpop.f32.mrf.mxu1 }
 0x113   :  { %732 = vmin.xlane.f32.xlu1 %v5605_v24  ;;  %730 = vmin.xlane.f32.xlu0 %v5609_v25 }
 0x114   :  { %v5633_v33 = vpop.f32.mrf.mxu0  ;;  %v5639_v35 = vpop.f32.mrf.mxu1 }
 0x116   :  { %v5641_v36 = vpop.f32.mrf.mxu0  ;;  %v5647_v38 = vpop.f32.mrf.mxu1 }
 0x117   :  { %796 = vmin.xlane.f32.xlu1 %v5611_v26  ;;  %794 = vmin.xlane.f32.xlu0 %v5615_v27 }
 0x118   :  { %v5645_v37 = vpop.f32.mrf.mxu0  ;;  %v5651_v39 = vpop.f32.mrf.mxu1 }
 0x11a   :  { %v5653_v40 = vpop.f32.mrf.mxu0  ;;  %v5659_v42 = vpop.f32.mrf.mxu1 }
 0x11b   :  { %736 = vmin.xlane.f32.xlu1 %v5617_v28  ;;  %734 = vmin.xlane.f32.xlu0 %v5621_v29 }
 0x11c   :  { %v5657_v41 = vpop.f32.mrf.mxu0  ;;  %v5663_v43 = vpop.f32.mrf.mxu1 }
 0x11e   :  { %v5665_v44 = vpop.f32.mrf.mxu0  ;;  %v5671_v46 = vpop.f32.mrf.mxu1 }
 0x11f   :  { %800 = vmin.xlane.f32.xlu1 %v5623_v30  ;;  %798 = vmin.xlane.f32.xlu0 %v5627_v31 }
 0x120   :  { %v5669_v45 = vpop.f32.mrf.mxu0  ;;  %v5675_v47 = vpop.f32.mrf.mxu1 }
 0x122   :  { %v5677_v48 = vpop.f32.mrf.mxu0  ;;  %v5683_v50 = vpop.f32.mrf.mxu1 }
 0x123   :  { %740 = vmin.xlane.f32.xlu1 %v5629_v32  ;;  %738 = vmin.xlane.f32.xlu0 %v5633_v33 }
 0x124   :  { %v5681_v49 = vpop.f32.mrf.mxu0  ;;  %v5687_v51 = vpop.f32.mrf.mxu1 }
 0x126   :  { %v5689_v52 = vpop.f32.mrf.mxu0  ;;  %v5695_v54 = vpop.f32.mrf.mxu1 }
 0x127   :  { %804 = vmin.xlane.f32.xlu1 %v5635_v34  ;;  %802 = vmin.xlane.f32.xlu0 %v5639_v35 }
 0x128   :  { %v5693_v53 = vpop.f32.mrf.mxu0  ;;  %v5699_v55 = vpop.f32.mrf.mxu1 }
 0x12a   :  { %v5701_v56 = vpop.f32.mrf.mxu0  ;;  %v5707_v58 = vpop.f32.mrf.mxu1 }
 0x12b   :  { %744 = vmin.xlane.f32.xlu1 %v5641_v36  ;;  %742 = vmin.xlane.f32.xlu0 %v5645_v37 }
 0x12c   :  { %v5705_v57 = vpop.f32.mrf.mxu0  ;;  %v5711_v59 = vpop.f32.mrf.mxu1 }
 0x12e   :  { %v5713_v60 = vpop.f32.mrf.mxu0  ;;  %v5719_v62 = vpop.f32.mrf.mxu1 }
 0x12f   :  { %808 = vmin.xlane.f32.xlu1 %v5647_v38  ;;  %806 = vmin.xlane.f32.xlu0 %v5651_v39 }
 0x130   :  { %v5717_v61 = vpop.f32.mrf.mxu0  ;;  %v5723_v63 = vpop.f32.mrf.mxu1 }
 0x131   :  { %7142 = vst [vmem:[#allocation4_spill] sm:$0xff] %v5717_v61  ;;  %7143 = vst [vmem:[#allocation5_spill] sm:$0xff] %v5723_v63 }
 0x132   :  { %v5725_v0 = vpop.f32.mrf.mxu0  ;;  %v5731_v2 = vpop.f32.mrf.mxu1 }
 0x133   :  { %748 = vmin.xlane.f32.xlu1 %v5653_v40  ;;  %746 = vmin.xlane.f32.xlu0 %v5657_v41 }
 0x134   :  { %v5729_v1 = vpop.f32.mrf.mxu0  ;;  %v5735_v3 = vpop.f32.mrf.mxu1 }
 0x135   :  { %7144 = vst [vmem:[#allocation6_spill] sm:$0xff] %v5729_v1  ;;  %7145 = vst [vmem:[#allocation7_spill] sm:$0xff] %v5735_v3 }
 0x136   :  { %v5737_v4 = vpop.f32.mrf.mxu0  ;;  %v5743_v6 = vpop.f32.mrf.mxu1 }
 0x137   :  { %812 = vmin.xlane.f32.xlu1 %v5659_v42  ;;  %810 = vmin.xlane.f32.xlu0 %v5663_v43 }
 0x138   :  { %v5741_v5 = vpop.f32.mrf.mxu0  ;;  %v5747_v7 = vpop.f32.mrf.mxu1 }
 0x139   :  { %7146 = vst [vmem:[#allocation8_spill] sm:$0xff] %v5741_v5  ;;  %7147 = vst [vmem:[#allocation9_spill] sm:$0xff] %v5747_v7 }
 0x13a   :  { %v5749_v8 = vpop.f32.mrf.mxu0  ;;  %v5755_v10 = vpop.f32.mrf.mxu1 }
 0x13b   :  { %752 = vmin.xlane.f32.xlu1 %v5665_v44  ;;  %750 = vmin.xlane.f32.xlu0 %v5669_v45 }
 0x13c   :  { %v5753_v9 = vpop.f32.mrf.mxu0  ;;  %v5759_v11 = vpop.f32.mrf.mxu1 }
 0x13d   :  { %7148 = vst [vmem:[#allocation10_spill] sm:$0xff] %v5753_v9  ;;  %7149 = vst [vmem:[#allocation11_spill] sm:$0xff] %v5759_v11 }
 0x13e   :  { %v5761_v12 = vpop.f32.mrf.mxu0  ;;  %v5767_v14 = vpop.f32.mrf.mxu1 }
 0x13f   :  { %816 = vmin.xlane.f32.xlu1 %v5671_v46  ;;  %814 = vmin.xlane.f32.xlu0 %v5675_v47  ;;  %7151 = vst [vmem:[#allocation13_spill] sm:$0xff] %v5767_v14 }
 0x140   :  { %v5765_v13 = vpop.f32.mrf.mxu0  ;;  %v5771_v15 = vpop.f32.mrf.mxu1 }
 0x141   :  { %7150 = vst [vmem:[#allocation12_spill] sm:$0xff] %v5765_v13  ;;  %7152 = vst [vmem:[#allocation14_spill] sm:$0xff] %v5771_v15 }
 0x143   :  { %756 = vmin.xlane.f32.xlu1 %v5677_v48  ;;  %754 = vmin.xlane.f32.xlu0 %v5681_v49 }
 0x147   :  { %820 = vmin.xlane.f32.xlu1 %v5683_v50  ;;  %818 = vmin.xlane.f32.xlu0 %v5687_v51 }
 0x14b   :  { %760 = vmin.xlane.f32.xlu1 %v5689_v52  ;;  %758 = vmin.xlane.f32.xlu0 %v5693_v53 }
 0x14f   :  { %824 = vmin.xlane.f32.xlu1 %v5695_v54  ;;  %822 = vmin.xlane.f32.xlu0 %v5699_v55 }
 0x153   :  { %764 = vmin.xlane.f32.xlu1 %v5701_v56  ;;  %762 = vmin.xlane.f32.xlu0 %v5705_v57 }
 0x157   :  { %828 = vmin.xlane.f32.xlu1 %v5707_v58  ;;  %826 = vmin.xlane.f32.xlu0 %v5711_v59 }
 0x15b   :  { %768 = vmin.xlane.f32.xlu1 %v5713_v60  ;;  %766 = vmin.xlane.f32.xlu0 %v5717_v61 }
 0x15f   :  { %832 = vmin.xlane.f32.xlu1 %v5719_v62  ;;  %830 = vmin.xlane.f32.xlu0 %v5723_v63 }
 0x163   :  { %772 = vmin.xlane.f32.xlu1 %v5725_v0  ;;  %770 = vmin.xlane.f32.xlu0 %v5729_v1 }
 0x167   :  { %836 = vmin.xlane.f32.xlu1 %v5731_v2  ;;  %834 = vmin.xlane.f32.xlu0 %v5735_v3 }
 0x16b   :  { %776 = vmin.xlane.f32.xlu1 %v5737_v4  ;;  %774 = vmin.xlane.f32.xlu0 %v5741_v5 }
 0x16f   :  { %840 = vmin.xlane.f32.xlu1 %v5743_v6  ;;  %838 = vmin.xlane.f32.xlu0 %v5747_v7 }
 0x173   :  { %780 = vmin.xlane.f32.xlu1 %v5749_v8  ;;  %778 = vmin.xlane.f32.xlu0 %v5753_v9  ;;  %v7016_v9 = vlaneseq }
 0x175   :  { %v5776_v7 = vand.u32 127, %v7016_v9 }
 0x177   :  { %844 = vmin.xlane.f32.xlu1 %v5755_v10  ;;  %842 = vmin.xlane.f32.xlu0 %v5759_v11 }
 0x17b   :  { %784 = vmin.xlane.f32.xlu1 %v5761_v12  ;;  %782 = vmin.xlane.f32.xlu0 %v5765_v13 }
 0x17f   :  { %848 = vmin.xlane.f32.xlu1 %v5767_v14  ;;  %846 = vmin.xlane.f32.xlu0 %v5771_v15 }
 0x18c   :  { %v789_v5 = vpop.xlane.xlu1 %788  ;;  %v725_v11 = vpop.xlane.xlu0 %724 }
 0x18d   :  { %vm883_vm1 = vcmp.eq.f32.partialorder %v5585_v17, %v789_v5  ;;  %vm851_vm2 = vcmp.eq.f32.partialorder %v5583_v16, %v725_v11 }
 0x18e   :  { %v5781_v3 = vsel %vm883_vm1, %v5776_v7, 128  ;;  %v5784_v13 = vsel %vm851_vm2, %v5776_v7, 128 }
 0x18f   :  { %7153 = vst [vmem:[#allocation15_spill] sm:$0xff] %v5781_v3  ;;  %v1441_v14 = vshra.s32 %v5781_v3, 16  ;;  %v993_v1 = vshra.s32 %v5784_v13, 16 }
 0x190   :  { %v723_v63 = vpop.xlane.xlu0 %722  ;;  %v729_v61 = vpop.xlane.xlu1 %728 }
 0x191   :  { %vm850_vm3 = vcmp.eq.f32.partialorder %v5589_v18, %v723_v63  ;;  %v5789_v9 = vcvt.s32.f32 %v1441_v14  ;;  %v5791_v15 = vcvt.s32.f32 %v993_v1  ;;  %vm853_vm4 = vcmp.eq.f32.partialorder %v5591_v19, %v729_v61 }
 0x192   :  { %v5794_v16 = vsel %vm850_vm3, %v5776_v7, 128  ;;  %v5812_v61 = vsel %vm853_vm4, %v5776_v7, 128 }
 0x193   :  { %7154 = vst [vmem:[#allocation16_spill] sm:$0xff] %v5789_v9  ;;  %v979_v17 = vshra.s32 %v5794_v16, 16  ;;  %1444 = vmin.xlane.f32.xlu1 %v5789_v9  ;;  %996 = vmin.xlane.f32.xlu0 %v5791_v15 }
 0x194   :  { %v787_v5 = vpop.xlane.xlu0 %786  ;;  %v793_v11 = vpop.xlane.xlu1 %792 }
 0x195   :  { %vm882_vm5 = vcmp.eq.f32.partialorder %v5593_v20, %v787_v5  ;;  %vm885_vm6 = vcmp.eq.f32.partialorder %v5597_v21, %v793_v11  ;;  %v5802_v18 = vcvt.s32.f32 %v979_v17  ;;  %v1021_v5 = vshra.s32 %v5812_v61, 16 }
 0x196   :  { %v5805_v63 = vsel %vm885_vm6, %v5776_v7, 128  ;;  %v5808_v1 = vsel %vm882_vm5, %v5776_v7, 128 }
 0x197   :  { %7155 = vst [vmem:[#allocation17_spill] sm:$0xff] %v5802_v18  ;;  %7156 = vst [vmem:[#allocation18_spill] sm:$0xff] %v5805_v63  ;;  %v1469_v19 = vshra.s32 %v5805_v63, 16  ;;  %982 = vmin.xlane.f32.xlu0 %v5802_v18  ;;  %v1427_v20 = vshra.s32 %v5808_v1, 16  ;;  %v5828_v18 = vcvt.s32.f32 %v1021_v5 }
 0x198   :  { %v791_v14 = vpop.xlane.xlu0 %790  ;;  %v727_v9 = vpop.xlane.xlu1 %726 }
 0x199   :  { %vm852_vm7 = vcmp.eq.f32.partialorder %v5599_v22, %v727_v9  ;;  %v5817_v21 = vcvt.s32.f32 %v1469_v19  ;;  %v5819_v17 = vcvt.s32.f32 %v1427_v20  ;;  %vm884_vm8 = vcmp.eq.f32.partialorder %v5603_v23, %v791_v14  ;;  %7159 = vst [vmem:[#allocation21_spill] sm:$0xff] %v5828_v18 }
 0x19a   :  { %v5823_v11 = vsel %vm852_vm7, %v5776_v7, 128  ;;  %v5832_v9 = vsel %vm884_vm8, %v5776_v7, 128  ;;  %vm1951_vm8 = vcmask 130112  }
 0x19b   :  { %7157 = vst [vmem:[#allocation19_spill] sm:$0xff] %v5817_v21  ;;  %7158 = vst [vmem:[#allocation20_spill] sm:$0xff] %v5823_v11  ;;  %1472 = vmin.xlane.f32.xlu1 %v5817_v21  ;;  %1430 = vmin.xlane.f32.xlu0 %v5819_v17  ;;  %v1007_v22 = vshra.s32 %v5823_v11, 16  ;;  %v1455_v5 = vshra.s32 %v5832_v9, 16 }
 0x19c   :  { %v733_v63 = vpop.xlane.xlu1 %732  ;;  %v731_v3 = vpop.xlane.xlu0 %730 }
 0x19d   :  { %vm855_vm9 = vcmp.eq.f32.partialorder %v5605_v24, %v733_v63  ;;  %v5837_v23 = vcvt.s32.f32 %v1007_v22  ;;  %vm854_vm11 = vcmp.eq.f32.partialorder %v5609_v25, %v731_v3 }
 0x19e   :  { %v5845_v11 = vsel %vm855_vm9, %v5776_v7, 128  ;;  %vm1958_vm9 = vcmask 195712  }
 0x19f   :  { %1024 = vmin.xlane.f32.xlu0 %v5828_v18  ;;  %7160 = vst [vmem:[#allocation22_spill] sm:$0xff] %v5837_v23  ;;  %7162 = vst [vmem:[#allocation24_spill] sm:$0xff] %v5845_v11  ;;  %v1049_v22 = vshra.s32 %v5845_v11, 16 }
 0x1a0   :  { %v797_v19 = vpop.xlane.xlu1 %796  ;;  %v795_v20 = vpop.xlane.xlu0 %794 }
 0x1a1   :  { %vm887_vm10 = vcmp.eq.f32.partialorder %v5611_v26, %v797_v19  ;;  %v5851_v26 = vcvt.s32.f32 %v1455_v5  ;;  %v5855_v19 = vsel %vm854_vm11, %v5776_v7, 128  ;;  %vm886_vm12 = vcmp.eq.f32.partialorder %v5615_v27, %v795_v20 }
 0x1a2   :  { %v5840_v14 = vsel %vm887_vm10, %v5776_v7, 128  ;;  %v1035_v5 = vshra.s32 %v5855_v19, 16  ;;  %vm1965_vm10 = vcmask 261312  }
 0x1a3   :  { %7161 = vst [vmem:[#allocation23_spill] sm:$0xff] %v5840_v14  ;;  %v1497_v21 = vshra.s32 %v5840_v14, 16  ;;  %1010 = vmin.xlane.f32.xlu0 %v5837_v23  ;;  %v5861_v14 = vcvt.s32.f32 %v1049_v22  ;;  %v5869_v23 = vsel %vm886_vm12, %v5776_v7, 128  ;;  %vm1972_vm12 = vcmask 326912  }
 0x1a4   :  { %v737_v24 = vpop.xlane.xlu1 %736  ;;  %v735_v63 = vpop.xlane.xlu0 %734  ;;  %7166 = vst [vmem:[#allocation28_spill] sm:$0xff] %v5869_v23  ;;  %v1483_v22 = vshra.s32 %v5869_v23, 16 }
 0x1a5   :  { %v5849_v18 = vcvt.s32.f32 %v1497_v21  ;;  %7164 = vst [vmem:[#allocation26_spill] sm:$0xff] %v5861_v14  ;;  %vm857_vm14 = vcmp.eq.f32.partialorder %v5617_v28, %v737_v24  ;;  %vm856_vm15 = vcmp.eq.f32.partialorder %v5621_v29, %v735_v63 }
 0x1a7   :  { %7163 = vst [vmem:[#allocation25_spill] sm:$0xff] %v5849_v18  ;;  %1500 = vmin.xlane.f32.xlu1 %v5849_v18  ;;  %1458 = vmin.xlane.f32.xlu0 %v5851_v26 }
 0x1a8   :  { %v801_v25 = vpop.xlane.xlu1 %800  ;;  %v799_v3 = vpop.xlane.xlu0 %798 }
 0x1a9   :  { %vm889_vm13 = vcmp.eq.f32.partialorder %v5623_v30, %v801_v25  ;;  %v5875_v30 = vcvt.s32.f32 %v1035_v5  ;;  %v5879_v25 = vsel %vm857_vm14, %v5776_v7, 128  ;;  %vm888_vm1 = vcmp.eq.f32.partialorder %v5627_v31, %v799_v3 }
 0x1aa   :  { %v5864_v21 = vsel %vm889_vm13, %v5776_v7, 128  ;;  %7168 = vst [vmem:[#allocation30_spill] sm:$0xff] %v5879_v25  ;;  %v1077_v5 = vshra.s32 %v5879_v25, 16  ;;  %v1974_v25 = vadd.s32 4294967256, %v5776_v7  ;;  %vm1979_vm13 = vcmask 392512  }
 0x1ab   :  { %7165 = vst [vmem:[#allocation27_spill] sm:$0xff] %v5864_v21  ;;  %v1525_v11 = vshra.s32 %v5864_v21, 16  ;;  %1052 = vmin.xlane.f32.xlu0 %v5861_v14  ;;  %v5885_v21 = vcvt.s32.f32 %v1483_v22  ;;  %v5893_v14 = vsel %vm856_vm15, %v5776_v7, 128  ;;  %vm1986_vm14 = vcmask 458112  }
 0x1ac   :  { %v741_v27 = vpop.xlane.xlu1 %740  ;;  %v739_v20 = vpop.xlane.xlu0 %738  ;;  %7171 = vst [vmem:[#allocation33_spill] sm:$0xff] %v5893_v14  ;;  %v5901_v22 = vcvt.s32.f32 %v1077_v5 }
 0x1ad   :  { %v5873_v18 = vcvt.s32.f32 %v1525_v11  ;;  %7169 = vst [vmem:[#allocation31_spill] sm:$0xff] %v5885_v21  ;;  %vm859_vm2 = vcmp.eq.f32.partialorder %v5629_v32, %v741_v27  ;;  %vm858_vm4 = vcmp.eq.f32.partialorder %v5633_v33, %v739_v20  ;;  %v1946_v33 = vadd.s32 4294967288, %v5776_v7 }
 0x1ae   :  { %7173 = vst [vmem:[#allocation35_spill] sm:$0xff] %v5901_v22  ;;  %v5921_v32 = vsel %vm859_vm2, %v5776_v7, 128  ;;  %vm2000_vm2 = vcmask 589312  }
 0x1af   :  { %7167 = vst [vmem:[#allocation29_spill] sm:$0xff] %v5873_v18  ;;  %1528 = vmin.xlane.f32.xlu1 %v5873_v18  ;;  %1038 = vmin.xlane.f32.xlu0 %v5875_v30  ;;  %v5905_v18 = vsel %vm888_vm1, %v5776_v7, 128  ;;  %7177 = vst [vmem:[#allocation39_spill] sm:$0xff] %v5921_v32 }
 0x1b0   :  { %v805_v28 = vpop.xlane.xlu1 %804  ;;  %v803_v24 = vpop.xlane.xlu0 %802  ;;  %7174 = vst [vmem:[#allocation36_spill] sm:$0xff] %v5905_v18 }
 0x1b1   :  { %vm891_vm0 = vcmp.eq.f32.partialorder %v5635_v34, %v805_v28  ;;  %v1063_v28 = vshra.s32 %v5893_v14, 16  ;;  %vm890_vm5 = vcmp.eq.f32.partialorder %v5639_v35, %v803_v24  ;;  %v1967_v24 = vadd.s32 4294967264, %v5776_v7 }
 0x1b2   :  { %v5888_v11 = vsel %vm891_vm0, %v5776_v7, 128  ;;  %vm1993_vm0 = vcmask 523712  }
 0x1b3   :  { %7170 = vst [vmem:[#allocation32_spill] sm:$0xff] %v5888_v11  ;;  %v1553_v23 = vshra.s32 %v5888_v11, 16  ;;  %1486 = vmin.xlane.f32.xlu0 %v5885_v21  ;;  %v1511_v11 = vshra.s32 %v5905_v18, 16  ;;  %v5935_v18 = vsel %vm858_vm4, %v5776_v7, 128  ;;  %vm2007_vm4 = vcmask 654912  }
 0x1b4   :  { %v745_v29 = vpop.xlane.xlu1 %744  ;;  %v5897_v63 = vpop.xlane.xlu0 %742  ;;  %7180 = vst [vmem:[#allocation42_spill] sm:$0xff] %v5935_v18  ;;  %v1091_v35 = vshra.s32 %v5935_v18, 16 }
 0x1b5   :  { %v5899_v34 = vcvt.s32.f32 %v1553_v23  ;;  %v5913_v23 = vcvt.s32.f32 %v1063_v28  ;;  %v5931_v28 = vcvt.s32.f32 %v1511_v11  ;;  %v1960_v11 = vadd.s32 4294967272, %v5776_v7 }
 0x1b6   :  { %vm861_vm7 = vcmp.eq.f32.partialorder %v5641_v36, %v745_v29  ;;  %v5982_v36 = vcvt.s32.f32 %v1091_v35  ;;  %vm860_vm11 = vcmp.eq.f32.partialorder %v5645_v37, %v5897_v63  ;;  %v2002_v37 = vadd.s32 4294967224, %v5776_v7 }
 0x1b7   :  { %7172 = vst [vmem:[#allocation34_spill] sm:$0xff] %v5899_v34  ;;  %1556 = vmin.xlane.f32.xlu1 %v5899_v34  ;;  %1080 = vmin.xlane.f32.xlu0 %v5901_v22  ;;  %7175 = vst [vmem:[#allocation37_spill] sm:$0xff] %v5913_v23  ;;  %v5990_v18 = vsel %vm861_vm7, %v5776_v7, 128  ;;  %v6013_v63 = vsel %vm860_vm11, %v5776_v7, 128  ;;  %vm2021_vm7 = vcmask 786112  }
 0x1b8   :  { %v809_v31 = vpop.xlane.xlu1 %808  ;;  %v5910_v3 = vpop.xlane.xlu0 %806  ;;  %7179 = vst [vmem:[#allocation41_spill] sm:$0xff] %v5931_v28  ;;  %7189 = vst [vmem:[#allocation50_spill] sm:$0xff] %v5990_v18 }
 0x1b9   :  { %vm893_vm3 = vcmp.eq.f32.partialorder %v5647_v38, %v809_v31  ;;  %v1105_v31 = vshra.s32 %v5921_v32, 16  ;;  %v1953_v32 = vadd.s32 4294967280, %v5776_v7  ;;  %7193 = vst [vmem:[#allocation54_spill] sm:$0xff] %v6013_v63  ;;  %vm892_vm15 = vcmp.eq.f32.partialorder %v5651_v39, %v5910_v3 }
 0x1ba   :  { %v5916_v5 = vsel %vm893_vm3, %v5776_v7, 128  ;;  %v6036_v39 = vsel %vm892_vm15, %v5776_v7, 128  ;;  %v2016_v3 = vadd.s32 4294967208, %v5776_v7 }
 0x1bb   :  { %7176 = vst [vmem:[#allocation38_spill] sm:$0xff] %v5916_v5  ;;  %v1581_v14 = vshra.s32 %v5916_v5, 16  ;;  %1066 = vmin.xlane.f32.xlu0 %v5913_v23  ;;  %v7181_v5 = vlaneseq  ;;  %v5949_v23 = vcvt.s32.f32 %v1105_v31  ;;  %7198 = vst [vmem:[#allocation59_spill] sm:$0xff] %v6036_v39 }
 0x1bc   :  { %v5925_v27 = vpop.xlane.xlu1 %748  ;;  %v5927_v34 = vpop.xlane.xlu0 %746 }
 0x1bd   :  { %v5929_v38 = vcvt.s32.f32 %v1581_v14  ;;  %v5938_v22 = vshrl.u32 %v7181_v5, 7  ;;  %7182 = vst [vmem:[#allocation43_spill] sm:$0xff] %v5949_v23  ;;  %vm863_vm1 = vcmp.eq.f32.partialorder %v5653_v40, %v5925_v27 }
 0x1bf   :  { %7178 = vst [vmem:[#allocation40_spill] sm:$0xff] %v5929_v38  ;;  %1584 = vmin.xlane.f32.xlu1 %v5929_v38  ;;  %1514 = vmin.xlane.f32.xlu0 %v5931_v28  ;;  %v5958_v28 = vsel %vm890_vm5, %v5776_v7, 128  ;;  %v5961_v21 = vsub.s32 %v1946_v33, %v5938_v22  ;;  %v5978_v33 = vsub.s32 %v1953_v32, %v5938_v22  ;;  %v1988_v32 = vadd.s32 4294967240, %v5776_v7 }
 0x1c0   :  { %v813_v14 = vpop.xlane.xlu1 %812  ;;  %v5944_v20 = vpop.xlane.xlu0 %810  ;;  %v1539_v29 = vshra.s32 %v5958_v28, 16  ;;  %v6057_v27 = vsub.s32 %v2016_v3, %v5938_v22  ;;  %vm862_vm5 = vcmp.eq.f32.partialorder %v5657_v41, %v5927_v34 }
 0x1c1   :  { %vm895_vm6 = vcmp.eq.f32.partialorder %v5659_v42, %v813_v14  ;;  %7184 = vst [vmem:[#allocation45_spill] sm:$0xff] %v5961_v21  ;;  %v5972_v14 = vsub.s32 %v5776_v7, %v5938_v22  ;;  %7187 = vst [vmem:[#allocation48_spill] sm:$0xff] %v5978_v33  ;;  %v6079_v41 = vsel %vm862_vm5, %v5776_v7, 128  ;;  %vm894_vm11 = vcmp.eq.f32.partialorder %v5663_v43, %v5944_v20 }
 0x1c2   :  { %v5952_v5 = vsel %vm895_vm6, %v5776_v7, 128  ;;  %7199 = vst [vmem:[#allocation60_spill] sm:$0xff] %v6057_v27  ;;  %vm2014_vm6 = vcmask 720512   ;;  %7203 = vst [vmem:[#allocation64_spill] sm:$0xff] %v6079_v41  ;;  %v1147_v43 = vshra.s32 %v6079_v41, 16  ;;  %v6099_v20 = vsel %vm894_vm11, %v5776_v7, 128 }
 0x1c3   :  { %7183 = vst [vmem:[#allocation44_spill] sm:$0xff] %v5952_v5  ;;  %v1609_v38 = vshra.s32 %v5952_v5, 16  ;;  %1108 = vmin.xlane.f32.xlu0 %v5949_v23  ;;  %7185 = vst [vmem:[#allocation46_spill] sm:$0xff] %v5972_v14  ;;  %v5975_v5 = vsub.s32 %v1960_v11, %v5938_v22  ;;  %v5986_v23 = vsub.s32 %v1967_v24, %v5938_v22  ;;  %v1981_v14 = vadd.s32 4294967248, %v5776_v7 }
 0x1c4   :  { %v5966_v42 = vpop.xlane.xlu1 %752  ;;  %v5968_v31 = vpop.xlane.xlu0 %750  ;;  %v5993_v11 = vsub.s32 %v1974_v25, %v5938_v22  ;;  %v1995_v24 = vadd.s32 4294967232, %v5776_v7  ;;  %v1133_v25 = vshra.s32 %v5990_v18, 16  ;;  %v1119_v18 = vshra.s32 %v6013_v63, 16 }
 0x1c5   :  { %7186 = vst [vmem:[#allocation47_spill] sm:$0xff] %v5975_v5  ;;  %v5980_v21 = vcvt.s32.f32 %v1609_v38  ;;  %7188 = vst [vmem:[#allocation49_spill] sm:$0xff] %v5986_v23  ;;  %v6005_v23 = vcvt.s32.f32 %v1539_v29  ;;  %v6016_v5 = vsub.s32 %v1988_v32, %v5938_v22  ;;  %v6032_v32 = vsub.s32 %v2002_v37, %v5938_v22 }
 0x1c6   :  { %7190 = vst [vmem:[#allocation51_spill] sm:$0xff] %v5993_v11  ;;  %v6009_v11 = vsub.s32 %v1981_v14, %v5938_v22  ;;  %v6026_v14 = vsub.s32 %v1995_v24, %v5938_v22  ;;  %v2023_v24 = vadd.s32 4294967200, %v5776_v7  ;;  %v6046_v37 = vcvt.s32.f32 %v1119_v18 }
 0x1c7   :  { %1612 = vmin.xlane.f32.xlu1 %v5980_v21  ;;  %1094 = vmin.xlane.f32.xlu0 %v5982_v36  ;;  %7191 = vst [vmem:[#allocation52_spill] sm:$0xff] %v6005_v23  ;;  %7194 = vst [vmem:[#allocation55_spill] sm:$0xff] %v6016_v5  ;;  %v2009_v5 = vadd.s32 4294967216, %v5776_v7  ;;  %v1567_v63 = vshra.s32 %v6036_v39, 16 }
 0x1c8   :  { %v6000_v38 = vpop.xlane.xlu1 %816  ;;  %v6002_v35 = vpop.xlane.xlu0 %814  ;;  %7192 = vst [vmem:[#allocation53_spill] sm:$0xff] %v6009_v11  ;;  %7195 = vst [vmem:[#allocation56_spill] sm:$0xff] %v6026_v14  ;;  %v6028_v11 = vcvt.s32.f32 %v1133_v25  ;;  %v6071_v39 = vsub.s32 %v2023_v24, %v5938_v22 }
 0x1c9   :  { %7197 = vst [vmem:[#allocation58_spill] sm:$0xff] %v6032_v32  ;;  %v6075_v27 = vcvt.s32.f32 %v1567_v63  ;;  %v2037_v63 = vadd.s32 4294967184, %v5776_v7  ;;  %vm897_vm11 = vcmp.eq.f32.partialorder %v5671_v46, %v6000_v38 }
 0x1ca   :  { %7196 = vst [vmem:[#allocation57_spill] sm:$0xff] %v6028_v11  ;;  %7201 = vst [vmem:[#allocation62_spill] sm:$0xff] %v6071_v39 }
 0x1cb   :  { %1542 = vmin.xlane.f32.xlu0 %v6005_v23  ;;  %v6053_v23 = vsel %vm863_vm1, %v5776_v7, 128  ;;  %vm865_vm1 = vcmp.eq.f32.partialorder %v5665_v44, %v5966_v42 }
 0x1cc   :  { %v6021_v29 = vpop.xlane.xlu1 %756  ;;  %v6023_v33 = vpop.xlane.xlu0 %754  ;;  %v6118_v44 = vsel %vm865_vm1, %v5776_v7, 128 }
 0x1cd   :  { %v1189_v38 = vshra.s32 %v6118_v44, 16 }
 0x1cf   :  { %1136 = vmin.xlane.f32.xlu0 %v6028_v11  ;;  %v6060_v11 = vsub.s32 %v2009_v5, %v5938_v22  ;;  %v1161_v5 = vshra.s32 %v6053_v23, 16 }
 0x1d0   :  { %v6043_v25 = vpop.xlane.xlu1 %820  ;;  %v819_v14 = vpop.xlane.xlu0 %818 }
 0x1d1   :  { %vm898_vm3 = vcmp.eq.f32.partialorder %v5687_v51, %v819_v14  ;;  %7200 = vst [vmem:[#allocation61_spill] sm:$0xff] %v6060_v11  ;;  %v2030_v14 = vadd.s32 4294967192, %v5776_v7  ;;  %v6092_v39 = vcvt.s32.f32 %v1161_v5  ;;  %v2044_v5 = vadd.s32 4294967176, %v5776_v7 }
 0x1d2   :  { %v6049_v32 = vsel %vm898_vm3, %v5776_v7, 128 }
 0x1d3   :  { %v1651_v40 = vshra.s32 %v6049_v32, 16  ;;  %1122 = vmin.xlane.f32.xlu0 %v6046_v37  ;;  %7205 = vst [vmem:[#allocation66_spill] sm:$0xff] %v6092_v39 }
 0x1d4   :  { %v6065_v51 = vpop.xlane.xlu1 %760  ;;  %v6067_v18 = vpop.xlane.xlu0 %758 }
 0x1d5   :  { %v6073_v3 = vcvt.s32.f32 %v1651_v40  ;;  %v6088_v40 = vsub.s32 %v2030_v14, %v5938_v22 }
 0x1d7   :  { %7202 = vst [vmem:[#allocation63_spill] sm:$0xff] %v6073_v3  ;;  %1654 = vmin.xlane.f32.xlu1 %v6073_v3  ;;  %1570 = vmin.xlane.f32.xlu0 %v6075_v27  ;;  %7204 = vst [vmem:[#allocation65_spill] sm:$0xff] %v6088_v40  ;;  %v6111_v40 = vcvt.s32.f32 %v1147_v43  ;;  %v6131_v43 = vsub.s32 %v2044_v5, %v5938_v22  ;;  %v6160_v5 = vcvt.s32.f32 %v1189_v38 }
 0x1d8   :  { %v825_v34 = vpop.xlane.xlu1 %824  ;;  %v6085_v24 = vpop.xlane.xlu0 %822 }
 0x1d9   :  { %vm901_vm15 = vcmp.eq.f32.partialorder %v5695_v54, %v825_v34  ;;  %7208 = vst [vmem:[#allocation69_spill] sm:$0xff] %v6131_v43 }
 0x1da   :  { %v6095_v11 = vsel %vm901_vm15, %v5776_v7, 128  ;;  %vm864_vm15 = vcmp.eq.f32.partialorder %v5669_v45, %v5968_v31 }
 0x1db   :  { %7206 = vst [vmem:[#allocation67_spill] sm:$0xff] %v6095_v11  ;;  %v1693_v3 = vshra.s32 %v6095_v11, 16  ;;  %1164 = vmin.xlane.f32.xlu0 %v6092_v39  ;;  %v1595_v11 = vshra.s32 %v6099_v20, 16  ;;  %v6122_v39 = vsub.s32 %v2037_v63, %v5938_v22  ;;  %v6153_v31 = vsel %vm864_vm15, %v5776_v7, 128 }
 0x1dc   :  { %v765_v54 = vpop.xlane.xlu1 %764  ;;  %v6105_v14 = vpop.xlane.xlu0 %762  ;;  %7211 = vst [vmem:[#allocation72_spill] sm:$0xff] %v6153_v31  ;;  %vm866_vm15 = vcmp.eq.f32.partialorder %v5681_v49, %v6023_v33 }
 0x1dd   :  { %vm871_vm3 = vcmp.eq.f32.partialorder %v5701_v56, %v765_v54  ;;  %v6109_v34 = vcvt.s32.f32 %v1693_v3  ;;  %7207 = vst [vmem:[#allocation68_spill] sm:$0xff] %v6122_v39  ;;  %v6138_v54 = vcvt.s32.f32 %v1595_v11  ;;  %v6145_v39 = vsel %vm897_vm11, %v5776_v7, 128 }
 0x1de   :  { %v6114_v41 = vsel %vm871_vm3, %v5776_v7, 128  ;;  %v6224_v33 = vsel %vm866_vm15, %v5776_v7, 128  ;;  %vm869_vm3 = vcmp.eq.f32.partialorder %v5689_v52, %v6065_v51  ;;  %vm868_vm15 = vcmp.eq.f32.partialorder %v5693_v53, %v6067_v18 }
 0x1df   :  { %v1273_v42 = vshra.s32 %v6114_v41, 16  ;;  %1696 = vmin.xlane.f32.xlu1 %v6109_v34  ;;  %1150 = vmin.xlane.f32.xlu0 %v6111_v40  ;;  %7210 = vst [vmem:[#allocation71_spill] sm:$0xff] %v6138_v54  ;;  %7217 = vst [vmem:[#allocation78_spill] sm:$0xff] %v6224_v33  ;;  %v6244_v51 = vsel %vm869_vm3, %v5776_v7, 128  ;;  %v6263_v18 = vsel %vm868_vm15, %v5776_v7, 128  ;;  %vm900_vm3 = vcmp.eq.f32.partialorder %v5699_v55, %v6085_v24 }
 0x1e0   :  { %v829_v56 = vpop.xlane.xlu1 %828  ;;  %v6128_v3 = vpop.xlane.xlu0 %826  ;;  %7222 = vst [vmem:[#allocation83_spill] sm:$0xff] %v6263_v18  ;;  %v1231_v55 = vshra.s32 %v6263_v18, 16 }
 0x1e1   :  { %vm903_vm1 = vcmp.eq.f32.partialorder %v5707_v58, %v829_v56  ;;  %v6136_v63 = vcvt.s32.f32 %v1273_v42  ;;  %v1637_v56 = vshra.s32 %v6145_v39, 16 }
 0x1e2   :  { %v6141_v46 = vsel %vm903_vm1, %v5776_v7, 128  ;;  %vm896_vm1 = vcmp.eq.f32.partialorder %v5675_v47, %v6002_v35  ;;  %v1175_v47 = vshra.s32 %v6153_v31, 16 }
 0x1e3   :  { %7209 = vst [vmem:[#allocation70_spill] sm:$0xff] %v6136_v63  ;;  %v1721_v22 = vshra.s32 %v6141_v46, 16  ;;  %1276 = vmin.xlane.f32.xlu1 %v6136_v63  ;;  %1598 = vmin.xlane.f32.xlu0 %v6138_v54  ;;  %v6180_v38 = vcvt.s32.f32 %v1637_v56 }
 0x1e4   :  { %v769_v45 = vpop.xlane.xlu1 %768  ;;  %v6150_v58 = vpop.xlane.xlu0 %766 }
 0x1e5   :  { %vm873_vm5 = vcmp.eq.f32.partialorder %v5713_v60, %v769_v45  ;;  %v6158_v11 = vcvt.s32.f32 %v1721_v22  ;;  %v6173_v60 = vsel %vm896_vm1, %v5776_v7, 128  ;;  %vm899_vm1 = vcmp.eq.f32.partialorder %v5683_v50, %v6043_v25 }
 0x1e6   :  { %v6163_v42 = vsel %vm873_vm5, %v5776_v7, 128  ;;  %7213 = vst [vmem:[#allocation74_spill] sm:$0xff] %v6173_v60  ;;  %vm867_vm5 = vcmp.eq.f32.partialorder %v5677_v48, %v6021_v29  ;;  %v6190_v48 = vcvt.s32.f32 %v1175_v47  ;;  %v6215_v25 = vsel %vm899_vm1, %v5776_v7, 128 }
 0x1e7   :  { %7212 = vst [vmem:[#allocation73_spill] sm:$0xff] %v6158_v11  ;;  %v1301_v43 = vshra.s32 %v6163_v42, 16  ;;  %1724 = vmin.xlane.f32.xlu1 %v6158_v11  ;;  %1192 = vmin.xlane.f32.xlu0 %v6160_v5  ;;  %v6194_v29 = vsel %vm867_vm5, %v5776_v7, 128  ;;  %vm2049_vm5 = vcmask 1048512   ;;  %7215 = vst [vmem:[#allocation76_spill] sm:$0xff] %v6215_v25 }
 0x1e8   :  { %v833_v63 = vpop.xlane.xlu1 %832  ;;  %v6169_v54 = vpop.xlane.xlu0 %830  ;;  %7214 = vst [vmem:[#allocation75_spill] sm:$0xff] %v6194_v29 }
 0x1e9   :  { %vm905_vm11 = vcmp.eq.f32.partialorder %v5719_v62, %v833_v63  ;;  %v6178_v35 = vcvt.s32.f32 %v1301_v43  ;;  %v1623_v62 = vshra.s32 %v6173_v60, 16 }
 0x1ea   :  { %v6183_v22 = vsel %vm905_vm11, %v5776_v7, 128 }
 0x1eb   :  { %v1749_v45 = vshra.s32 %v6183_v22, 16  ;;  %1304 = vmin.xlane.f32.xlu1 %v6178_v35  ;;  %1640 = vmin.xlane.f32.xlu0 %v6180_v38  ;;  %v6211_v50 = vcvt.s32.f32 %v1623_v62 }
 0x1ec   :  { %v773_v31 = vpop.xlane.xlu1 %772  ;;  %v6188_v11 = vpop.xlane.xlu0 %770 }
 0x1ed   :  { %vm875_vm11 = vcmp.eq.f32.partialorder %v5725_v0, %v773_v31  ;;  %v6199_v43 = vcvt.s32.f32 %v1749_v45  ;;  %v1217_v0 = vshra.s32 %v6194_v29, 16 }
 0x1ee   :  { %v6202_v63 = vsel %vm875_vm11, %v5776_v7, 128 }
 0x1ef   :  { %v1329_v56 = vshra.s32 %v6202_v63, 16  ;;  %1752 = vmin.xlane.f32.xlu1 %v6199_v43  ;;  %1178 = vmin.xlane.f32.xlu0 %v6190_v48 }
 0x1f0   :  { %v837_v47 = vpop.xlane.xlu1 %836  ;;  %v6209_v60 = vpop.xlane.xlu0 %834 }
 0x1f1   :  { %vm907_vm11 = vcmp.eq.f32.partialorder %v5731_v2, %v837_v47  ;;  %v6218_v31 = vcvt.s32.f32 %v1329_v56  ;;  %v6233_v2 = vcvt.s32.f32 %v1217_v0  ;;  %v1665_v56 = vshra.s32 %v6215_v25, 16 }
 0x1f2   :  { %v6221_v49 = vsel %vm907_vm11, %v5776_v7, 128 }
 0x1f3   :  { %7216 = vst [vmem:[#allocation77_spill] sm:$0xff] %v6221_v49  ;;  %v1777_v45 = vshra.s32 %v6221_v49, 16  ;;  %1332 = vmin.xlane.f32.xlu1 %v6218_v31  ;;  %1626 = vmin.xlane.f32.xlu0 %v6211_v50 }
 0x1f4   :  { %v777_v62 = vpop.xlane.xlu1 %776  ;;  %v6231_v29 = vpop.xlane.xlu0 %774 }
 0x1f5   :  { %vm877_vm1 = vcmp.eq.f32.partialorder %v5737_v4, %v777_v62  ;;  %v6237_v47 = vcvt.s32.f32 %v1777_v45  ;;  %v6252_v4 = vcvt.s32.f32 %v1665_v56  ;;  %v1203_v45 = vshra.s32 %v6224_v33, 16 }
 0x1f6   :  { %v6240_v49 = vsel %vm877_vm1, %v5776_v7, 128 }
 0x1f7   :  { %7218 = vst [vmem:[#allocation79_spill] sm:$0xff] %v6237_v47  ;;  %7219 = vst [vmem:[#allocation80_spill] sm:$0xff] %v6240_v49  ;;  %v1357_v52 = vshra.s32 %v6240_v49, 16  ;;  %1780 = vmin.xlane.f32.xlu1 %v6237_v47  ;;  %1220 = vmin.xlane.f32.xlu0 %v6233_v2  ;;  %v6269_v33 = vcvt.s32.f32 %v1203_v45 }
 0x1f8   :  { %v841_v0 = vpop.xlane.xlu1 %840  ;;  %v6250_v25 = vpop.xlane.xlu0 %838  ;;  %7220 = vst [vmem:[#allocation81_spill] sm:$0xff] %v6252_v4 }
 0x1f9   :  { %vm909_vm11 = vcmp.eq.f32.partialorder %v5743_v6, %v841_v0  ;;  %v6256_v62 = vcvt.s32.f32 %v1357_v52  ;;  %7223 = vst [vmem:[#allocation84_spill] sm:$0xff] %v6269_v33  ;;  %v1245_v6 = vshra.s32 %v6244_v51, 16 }
 0x1fa   :  { %v6259_v49 = vsel %vm909_vm11, %v5776_v7, 128  ;;  %vm870_vm11 = vcmp.eq.f32.partialorder %v5705_v57, %v6105_v14  ;;  %v6304_v57 = vcvt.s32.f32 %v1231_v55  ;;  %v7230_v55 = vld [vmem:[#allocation14_spill] sm:$0xff] }
 0x1fb   :  { %7221 = vst [vmem:[#allocation82_spill] sm:$0xff] %v6256_v62  ;;  %v1805_v53 = vshra.s32 %v6259_v49, 16  ;;  %1360 = vmin.xlane.f32.xlu1 %v6256_v62  ;;  %1668 = vmin.xlane.f32.xlu0 %v6252_v4  ;;  %v6292_v24 = vcvt.s32.f32 %v1245_v6  ;;  %v6309_v14 = vsel %vm870_vm11, %v5776_v7, 128 }
 0x1fc   :  { %v781_v56 = vpop.xlane.xlu1 %780  ;;  %v6267_v47 = vpop.xlane.xlu0 %778  ;;  %7227 = vst [vmem:[#allocation88_spill] sm:$0xff] %v6304_v57  ;;  %7228 = vst [vmem:[#allocation89_spill] sm:$0xff] %v6309_v14 }
 0x1fd   :  { %vm879_vm1 = vcmp.eq.f32.partialorder %v5749_v8, %v781_v56  ;;  %v6278_v0 = vcvt.s32.f32 %v1805_v53  ;;  %v6287_v8 = vsel %vm900_vm3, %v5776_v7, 128  ;;  %7226 = vst [vmem:[#allocation87_spill] sm:$0xff] %v6292_v24 }
 0x1fe   :  { %v6276_v52 = vsel %vm879_vm1, %v5776_v7, 128  ;;  %7225 = vst [vmem:[#allocation86_spill] sm:$0xff] %v6287_v8 }
 0x1ff   :  { %7224 = vst [vmem:[#allocation85_spill] sm:$0xff] %v6278_v0  ;;  %v1385_v62 = vshra.s32 %v6276_v52, 16  ;;  %1808 = vmin.xlane.f32.xlu1 %v6278_v0  ;;  %1206 = vmin.xlane.f32.xlu0 %v6269_v33 }
 0x200   :  { %v845_v45 = vpop.xlane.xlu1 %844  ;;  %v6283_v4 = vpop.xlane.xlu0 %842 }
 0x201   :  { %vm911_vm1 = vcmp.eq.f32.partialorder %v5755_v10, %v845_v45  ;;  %v6297_v56 = vcvt.s32.f32 %v1385_v62  ;;  %v1679_v10 = vshra.s32 %v6287_v8, 16 }
 0x202   :  { %v6295_v53 = vsel %vm911_vm1, %v5776_v7, 128  ;;  %vm902_vm1 = vcmp.eq.f32.partialorder %v5711_v59, %v6128_v3 }
 0x203   :  { %v1833_v33 = vshra.s32 %v6295_v53, 16  ;;  %1388 = vmin.xlane.f32.xlu1 %v6297_v56  ;;  %1248 = vmin.xlane.f32.xlu0 %v6292_v24  ;;  %v6324_v8 = vcvt.s32.f32 %v1679_v10  ;;  %v6331_v24 = vsel %vm902_vm1, %v5776_v7, 128 }
 0x204   :  { %v785_v18 = vpop.xlane.xlu1 %784  ;;  %v6302_v0 = vpop.xlane.xlu0 %782  ;;  %7231 = vst [vmem:[#allocation14_spill] sm:$0xff] %v6331_v24 }
 0x205   :  { %vm881_vm3 = vcmp.eq.f32.partialorder %v5761_v12, %v785_v18  ;;  %v6314_v6 = vcvt.s32.f32 %v1833_v33 }
 0x206   :  { %v6312_v62 = vsel %vm881_vm3, %v5776_v7, 128 }
 0x207   :  { %7229 = vst [vmem:[#allocation90_spill] sm:$0xff] %v6312_v62  ;;  %v1413_v45 = vshra.s32 %v6312_v62, 16  ;;  %1836 = vmin.xlane.f32.xlu1 %v6314_v6  ;;  %1234 = vmin.xlane.f32.xlu0 %v6304_v57  ;;  %v1259_v62 = vshra.s32 %v6309_v14, 16  ;;  %v7232_v57 = vld [vmem:[#allocation4_spill] sm:$0xff] }
 0x208   :  { %v6321_v12 = vpop.xlane.xlu1 %848  ;;  %v847_v18 = vpop.xlane.xlu0 %846  ;;  %vm872_vm3 = vcmp.eq.f32.partialorder %v7232_v57, %v6150_v58 }
 0x209   :  { %vm912_vm11 = vcmp.eq.f32.partialorder %v7230_v55, %v847_v18  ;;  %v6333_v59 = vcvt.s32.f32 %v1413_v45  ;;  %v6342_v18 = vcvt.s32.f32 %v1259_v62  ;;  %v1707_v55 = vshra.s32 %v6331_v24, 16  ;;  %v7235_v45 = vld [vmem:[#allocation5_spill] sm:$0xff]  ;;  %v7238_v62 = vld [vmem:[#allocation6_spill] sm:$0xff] }
 0x20a   :  { %v6327_v33 = vsel %vm912_vm11, %v5776_v7, 128  ;;  %v6346_v14 = vsel %vm872_vm3, %v5776_v7, 128  ;;  %vm904_vm1 = vcmp.eq.f32.partialorder %v7235_v45, %v6169_v54  ;;  %vm874_vm11 = vcmp.eq.f32.partialorder %v7238_v62, %v6188_v11 }
 0x20b   :  { %v1847_v3 = vshra.s32 %v6327_v33, 16  ;;  %1682 = vmin.xlane.f32.xlu0 %v6324_v8  ;;  %1416 = vmin.xlane.f32.xlu1 %v6333_v59  ;;  %7234 = vst [vmem:[#allocation91_spill] sm:$0xff] %v6346_v14  ;;  %v6352_v58 = vcvt.s32.f32 %v1707_v55  ;;  %v1287_v57 = vshra.s32 %v6346_v14, 16  ;;  %v6365_v45 = vsel %vm874_vm11, %v5776_v7, 128  ;;  %v7240_v55 = vld [vmem:[#allocation7_spill] sm:$0xff] }
 0x20c   :  { %7239 = vst [vmem:[#allocation6_spill] sm:$0xff] %v6365_v45  ;;  %vm906_vm3 = vcmp.eq.f32.partialorder %v7240_v55, %v6209_v60  ;;  %v992_v14 = vand.u32 65535, %v5784_v13  ;;  %v1315_v11 = vshra.s32 %v6365_v45, 16 }
 0x20d   :  { %v6340_v10 = vcvt.s32.f32 %v1847_v3  ;;  %7236 = vst [vmem:[#allocation5_spill] sm:$0xff] %v6352_v58  ;;  %v6356_v3 = vsel %vm904_vm1, %v5776_v7, 128  ;;  %v6361_v24 = vcvt.s32.f32 %v1287_v57  ;;  %v6375_v62 = vsel %vm906_vm3, %v5776_v7, 128  ;;  %v7243_v57 = vld [vmem:[#allocation8_spill] sm:$0xff] }
 0x20e   :  { %7237 = vst [vmem:[#allocation92_spill] sm:$0xff] %v6356_v3  ;;  %v1735_v54 = vshra.s32 %v6356_v3, 16  ;;  %7242 = vst [vmem:[#allocation93_spill] sm:$0xff] %v6375_v62  ;;  %vm876_vm1 = vcmp.eq.f32.partialorder %v7243_v57, %v6231_v29  ;;  %v978_v3 = vand.u32 65535, %v5794_v16  ;;  %v994_v60 = vcvt.s32.f32 %v992_v14  ;;  %v7244_v29 = vld [vmem:[#allocation9_spill] sm:$0xff] }
 0x20f   :  { %7233 = vst [vmem:[#allocation4_spill] sm:$0xff] %v6340_v10  ;;  %1262 = vmin.xlane.f32.xlu0 %v6342_v18  ;;  %1850 = vmin.xlane.f32.xlu1 %v6340_v10  ;;  %v6383_v55 = vcvt.s32.f32 %v1315_v11  ;;  %v1763_v13 = vshra.s32 %v6375_v62, 16  ;;  %vm908_vm3 = vcmp.eq.f32.partialorder %v7244_v29, %v6250_v25  ;;  %v1426_v16 = vand.u32 65535, %v5808_v1  ;;  %v7247_v25 = vld [vmem:[#allocation10_spill] sm:$0xff] }
 0x210   :  { %v6371_v10 = vcvt.s32.f32 %v1735_v54  ;;  %v6389_v54 = vsel %vm876_vm1, %v5776_v7, 128  ;;  %v980_v11 = vcvt.s32.f32 %v978_v3  ;;  %vm878_vm1 = vcmp.eq.f32.partialorder %v7247_v25, %v6267_v47  ;;  %v7250_v47 = vld [vmem:[#allocation11_spill] sm:$0xff] }
 0x211   :  { %v6397_v57 = vcvt.s32.f32 %v1763_v13  ;;  %v1343_v62 = vshra.s32 %v6389_v54, 16  ;;  %v1020_v1 = vand.u32 65535, %v5812_v61  ;;  %v7251_v61 = vld [vmem:[#allocation20_spill] sm:$0xff] }
 0x212   :  { %7241 = vst [vmem:[#allocation7_spill] sm:$0xff] %v6371_v10 }
 0x213   :  { %1710 = vmin.xlane.f32.xlu0 %v6352_v58  ;;  %v6411_v13 = vcvt.s32.f32 %v1343_v62  ;;  %v1022_v62 = vcvt.s32.f32 %v1020_v1 }
 0x217   :  { %1290 = vmin.xlane.f32.xlu0 %v6361_v24 }
 0x21b   :  { %1738 = vmin.xlane.f32.xlu0 %v6371_v10 }
 0x21c   :  { %v6381_v58 = vpop.xlane.xlu0 %996 }
 0x21d   :  { %vm998_vm11 = vcmp.eq.f32.partialorder %v5791_v15, %v6381_v58  ;;  %v7245_v15 = vld [vmem:[#allocation17_spill] sm:$0xff] }
 0x21e   :  { %v999_v45 = vsel %vm998_vm11, %v994_v60, inf  ;;  %v6403_v60 = vsel %vm908_vm3, %v5776_v7, 128 }
 0x21f   :  { %1318 = vmin.xlane.f32.xlu0 %v6383_v55  ;;  %1000 = vmin.xlane.f32.xlu1 %v999_v45  ;;  %7246 = vst [vmem:[#allocation8_spill] sm:$0xff] %v6403_v60  ;;  %v1428_v45 = vcvt.s32.f32 %v1426_v16  ;;  %v1791_v29 = vshra.s32 %v6403_v60, 16 }
 0x220   :  { %v6395_v14 = vpop.xlane.xlu0 %982 }
 0x221   :  { %vm984_vm15 = vcmp.eq.f32.partialorder %v7245_v15, %v6395_v14  ;;  %v6425_v25 = vcvt.s32.f32 %v1791_v29 }
 0x222   :  { %v985_v10 = vsel %vm984_vm15, %v980_v11, inf  ;;  %v6417_v11 = vsel %vm878_vm1, %v5776_v7, 128  ;;  %vm910_vm15 = vcmp.eq.f32.partialorder %v7250_v47, %v6283_v4  ;;  %v7254_v4 = vld [vmem:[#allocation13_spill] sm:$0xff] }
 0x223   :  { %1766 = vmin.xlane.f32.xlu0 %v6397_v57  ;;  %986 = vmin.xlane.f32.xlu1 %v985_v10  ;;  %7249 = vst [vmem:[#allocation17_spill] sm:$0xff] %v6417_v11  ;;  %v1006_v10 = vand.u32 65535, %v7251_v61  ;;  %vm913_vm1 = vcmp.eq.f32.partialorder %v7254_v4, %v6321_v12  ;;  %v7256_v61 = vld [vmem:[#allocation22_spill] sm:$0xff]  ;;  %v7258_v12 = vld [vmem:[#allocation12_spill] sm:$0xff] }
 0x224   :  { %v6409_v3 = vpop.xlane.xlu0 %1430 }
 0x225   :  { %7248 = vst [vmem:[#allocation9_spill] sm:$0xff] %v6409_v3  ;;  %vm1432_vm11 = vcmp.eq.f32.partialorder %v5819_v17, %v6409_v3  ;;  %v7252_v17 = vld [vmem:[#allocation21_spill] sm:$0xff]  ;;  %v1371_v3 = vshra.s32 %v6417_v11, 16  ;;  %v1008_v29 = vcvt.s32.f32 %v1006_v10 }
 0x226   :  { %v1433_v15 = vsel %vm1432_vm11, %v1428_v45, inf  ;;  %v6431_v45 = vsel %vm910_vm15, %v5776_v7, 128  ;;  %vm880_vm15 = vcmp.eq.f32.partialorder %v7258_v12, %v6302_v0  ;;  %v1034_v0 = vand.u32 65535, %v5855_v19 }
 0x227   :  { %1346 = vmin.xlane.f32.xlu0 %v6411_v13  ;;  %1434 = vmin.xlane.f32.xlu1 %v1433_v15  ;;  %7253 = vst [vmem:[#allocation10_spill] sm:$0xff] %v6431_v45  ;;  %v1454_v15 = vand.u32 65535, %v5832_v9  ;;  %v6439_v47 = vcvt.s32.f32 %v1371_v3  ;;  %v7259_v9 = vld [vmem:[#allocation24_spill] sm:$0xff] }
 0x228   :  { %v6423_v16 = vpop.xlane.xlu0 %1024 }
 0x229   :  { %vm1026_vm3 = vcmp.eq.f32.partialorder %v7252_v17, %v6423_v16  ;;  %7255 = vst [vmem:[#allocation11_spill] sm:$0xff] %v6439_v47  ;;  %v1819_v17 = vshra.s32 %v6431_v45, 16  ;;  %v1456_v3 = vcvt.s32.f32 %v1454_v15 }
 0x22a   :  { %v1027_v60 = vsel %vm1026_vm3, %v1022_v62, inf  ;;  %v6445_v62 = vsel %vm913_vm1, %v5776_v7, 128 }
 0x22b   :  { %1794 = vmin.xlane.f32.xlu0 %v6425_v25  ;;  %1028 = vmin.xlane.f32.xlu1 %v1027_v60  ;;  %7257 = vst [vmem:[#allocation20_spill] sm:$0xff] %v6445_v62  ;;  %v1048_v60 = vand.u32 65535, %v7259_v9  ;;  %v6453_v4 = vcvt.s32.f32 %v1819_v17  ;;  %v7265_v17 = vld [vmem:[#allocation26_spill] sm:$0xff] }
 0x22c   :  { %v6437_v1 = vpop.xlane.xlu0 %1010 }
 0x22d   :  { %vm1012_vm11 = vcmp.eq.f32.partialorder %v7256_v61, %v6437_v1  ;;  %7261 = vst [vmem:[#allocation13_spill] sm:$0xff] %v6453_v4  ;;  %v1861_v61 = vshra.s32 %v6445_v62, 16  ;;  %v1050_v12 = vcvt.s32.f32 %v1048_v60  ;;  %v7267_v62 = vld [vmem:[#allocation28_spill] sm:$0xff]  ;;  %v1036_v60 = vcvt.s32.f32 %v1034_v0 }
 0x22e   :  { %v1013_v11 = vsel %vm1012_vm11, %v1008_v29, inf  ;;  %v6459_v29 = vsel %vm880_vm15, %v5776_v7, 128  ;;  %v7266_v7 = vld [vmem:[#allocation15_spill] sm:$0xff] }
 0x22f   :  { %1374 = vmin.xlane.f32.xlu0 %v6439_v47  ;;  %1014 = vmin.xlane.f32.xlu1 %v1013_v11  ;;  %7262 = vst [vmem:[#allocation22_spill] sm:$0xff] %v6459_v29  ;;  %v6465_v15 = vcvt.s32.f32 %v1861_v61  ;;  %v7282_v47 = vld [vmem:[#allocation35_spill] sm:$0xff] }
 0x230   :  { %v6451_v10 = vpop.xlane.xlu0 %1458 }
 0x231   :  { %7260 = vst [vmem:[#allocation21_spill] sm:$0xff] %v6451_v10  ;;  %vm1460_vm3 = vcmp.eq.f32.partialorder %v5851_v26, %v6451_v10  ;;  %7264 = vst [vmem:[#allocation24_spill] sm:$0xff] %v6465_v15  ;;  %v1399_v26 = vshra.s32 %v6459_v29, 16  ;;  %v6473_v10 = vpop.xlane.xlu1 %1444 }
 0x232   :  { %v1461_v45 = vsel %vm1460_vm3, %v1456_v3, inf  ;;  %v1440_v3 = vand.u32 65535, %v7266_v7  ;;  %7268 = vst [vmem:[#allocation26_spill] sm:$0xff] %v6473_v10 }
 0x233   :  { %1822 = vmin.xlane.f32.xlu0 %v6453_v4  ;;  %1462 = vmin.xlane.f32.xlu1 %v1461_v45  ;;  %v1482_v45 = vand.u32 65535, %v7267_v62  ;;  %v6477_v61 = vcvt.s32.f32 %v1399_v26  ;;  %v7273_v62 = vld [vmem:[#allocation30_spill] sm:$0xff]  ;;  %v7276_v4 = vld [vmem:[#allocation31_spill] sm:$0xff] }
 0x234   :  { %v6463_v11 = vpop.xlane.xlu0 %1052  ;;  %v1442_v0 = vcvt.s32.f32 %v1440_v3 }
 0x235   :  { %7263 = vst [vmem:[#allocation12_spill] sm:$0xff] %v6463_v11  ;;  %vm1054_vm1 = vcmp.eq.f32.partialorder %v7265_v17, %v6463_v11  ;;  %7270 = vst [vmem:[#allocation28_spill] sm:$0xff] %v6477_v61  ;;  %v6486_v11 = vpop.xlane.xlu1 %1472  ;;  %v1484_v26 = vcvt.s32.f32 %v1482_v45 }
 0x236   :  { %v1055_v9 = vsel %vm1054_vm1, %v1050_v12, inf  ;;  %v7271_v12 = vld [vmem:[#allocation16_spill] sm:$0xff] }
 0x237   :  { %1864 = vmin.xlane.f32.xlu0 %v6465_v15  ;;  %1056 = vmin.xlane.f32.xlu1 %v1055_v9  ;;  %vm1446_vm15 = vcmp.eq.f32.partialorder %v7271_v12, %v6473_v10  ;;  %v7272_v9 = vld [vmem:[#allocation18_spill] sm:$0xff]  ;;  %v1076_v15 = vand.u32 65535, %v7273_v62  ;;  %7274 = vst [vmem:[#allocation16_spill] sm:$0xff] %v6486_v11  ;;  %v7278_v12 = vld [vmem:[#allocation23_spill] sm:$0xff] }
 0x238   :  { %v6475_v19 = vpop.xlane.xlu0 %1038  ;;  %v1468_v7 = vand.u32 65535, %v7272_v9  ;;  %v1496_v9 = vand.u32 65535, %v7278_v12 }
 0x239   :  { %7269 = vst [vmem:[#allocation15_spill] sm:$0xff] %v6475_v19  ;;  %vm1040_vm11 = vcmp.eq.f32.partialorder %v5875_v30, %v6475_v19  ;;  %v1447_v30 = vsel %vm1446_vm15, %v1442_v0, inf  ;;  %v6496_v10 = vpop.xlane.xlu1 %1500  ;;  %v1078_v45 = vcvt.s32.f32 %v1076_v15 }
 0x23a   :  { %v1041_v17 = vsel %vm1040_vm11, %v1036_v60, inf  ;;  %7280 = vst [vmem:[#allocation30_spill] sm:$0xff] %v6496_v10  ;;  %v1470_v3 = vcvt.s32.f32 %v1468_v7  ;;  %v1498_v7 = vcvt.s32.f32 %v1496_v9 }
 0x23b   :  { %1402 = vmin.xlane.f32.xlu0 %v6477_v61  ;;  %1042 = vmin.xlane.f32.xlu1 %v1041_v17  ;;  %v7277_v17 = vld [vmem:[#allocation19_spill] sm:$0xff]  ;;  %v7279_v61 = vld [vmem:[#allocation33_spill] sm:$0xff] }
 0x23c   :  { %v6488_v29 = vpop.xlane.xlu0 %1486  ;;  %vm1474_vm1 = vcmp.eq.f32.partialorder %v7277_v17, %v6486_v11  ;;  %v1062_v62 = vand.u32 65535, %v7279_v61  ;;  %v7285_v17 = vld [vmem:[#allocation36_spill] sm:$0xff] }
 0x23d   :  { %7275 = vst [vmem:[#allocation18_spill] sm:$0xff] %v6488_v29  ;;  %vm1488_vm3 = vcmp.eq.f32.partialorder %v7276_v4, %v6488_v29  ;;  %v1475_v4 = vsel %vm1474_vm1, %v1470_v3, inf  ;;  %v1510_v61 = vand.u32 65535, %v7285_v17  ;;  %v6506_v12 = vpop.xlane.xlu1 %1528  ;;  %v7288_v29 = vld [vmem:[#allocation37_spill] sm:$0xff] }
 0x23e   :  { %v1489_v60 = vsel %vm1488_vm3, %v1484_v26, inf  ;;  %v7283_v26 = vld [vmem:[#allocation25_spill] sm:$0xff]  ;;  %7286 = vst [vmem:[#allocation19_spill] sm:$0xff] %v6506_v12  ;;  %v1064_v15 = vcvt.s32.f32 %v1062_v62 }
 0x23f   :  { %1448 = vmin.xlane.f32.xlu0 %v1447_v30  ;;  %1490 = vmin.xlane.f32.xlu1 %v1489_v60  ;;  %vm1502_vm15 = vcmp.eq.f32.partialorder %v7283_v26, %v6496_v10  ;;  %v7284_v30 = vld [vmem:[#allocation27_spill] sm:$0xff]  ;;  %v1512_v62 = vcvt.s32.f32 %v1510_v61  ;;  %v7292_v10 = vld [vmem:[#allocation41_spill] sm:$0xff] }
 0x240   :  { %v6498_v19 = vpop.xlane.xlu0 %1080  ;;  %v1524_v60 = vand.u32 65535, %v7284_v30  ;;  %v7291_v26 = vld [vmem:[#allocation39_spill] sm:$0xff] }
 0x241   :  { %7281 = vst [vmem:[#allocation31_spill] sm:$0xff] %v6498_v19  ;;  %vm1082_vm11 = vcmp.eq.f32.partialorder %v7282_v47, %v6498_v19  ;;  %v1503_v47 = vsel %vm1502_vm15, %v1498_v7, inf  ;;  %v1104_v30 = vand.u32 65535, %v7291_v26  ;;  %v6516_v17 = vpop.xlane.xlu1 %1556 }
 0x242   :  { %v1083_v0 = vsel %vm1082_vm11, %v1078_v45, inf  ;;  %v7289_v45 = vld [vmem:[#allocation29_spill] sm:$0xff]  ;;  %v1526_v9 = vcvt.s32.f32 %v1524_v60 }
 0x243   :  { %1476 = vmin.xlane.f32.xlu0 %v1475_v4  ;;  %1084 = vmin.xlane.f32.xlu1 %v1083_v0  ;;  %vm1530_vm1 = vcmp.eq.f32.partialorder %v7289_v45, %v6506_v12  ;;  %v7290_v4 = vld [vmem:[#allocation32_spill] sm:$0xff]  ;;  %v7295_v45 = vld [vmem:[#allocation42_spill] sm:$0xff]  ;;  %v1106_v61 = vcvt.s32.f32 %v1104_v30 }
 0x244   :  { %v6508_v11 = vpop.xlane.xlu0 %1066  ;;  %v1552_v0 = vand.u32 65535, %v7290_v4  ;;  %v1090_v4 = vand.u32 65535, %v7295_v45 }
 0x245   :  { %7287 = vst [vmem:[#allocation23_spill] sm:$0xff] %v6508_v11  ;;  %vm1068_vm3 = vcmp.eq.f32.partialorder %v7288_v29, %v6508_v11  ;;  %v1531_v29 = vsel %vm1530_vm1, %v1526_v9, inf  ;;  %v7296_v11 = vld [vmem:[#allocation43_spill] sm:$0xff] }
 0x246   :  { %v1069_v3 = vsel %vm1068_vm3, %v1064_v15, inf  ;;  %v7293_v15 = vld [vmem:[#allocation34_spill] sm:$0xff]  ;;  %v1554_v60 = vcvt.s32.f32 %v1552_v0  ;;  %v1092_v30 = vcvt.s32.f32 %v1090_v4 }
 0x247   :  { %1504 = vmin.xlane.f32.xlu0 %v1503_v47  ;;  %1070 = vmin.xlane.f32.xlu1 %v1069_v3  ;;  %vm1558_vm15 = vcmp.eq.f32.partialorder %v7293_v15, %v6516_v17  ;;  %v7294_v47 = vld [vmem:[#allocation38_spill] sm:$0xff]  ;;  %v1538_v15 = vand.u32 65535, %v5958_v28 }
 0x248   :  { %v6518_v19 = vpop.xlane.xlu0 %1514  ;;  %v1580_v3 = vand.u32 65535, %v7294_v47  ;;  %v6526_v26 = vpop.xlane.xlu1 %1584 }
 0x249   :  { %vm1516_vm11 = vcmp.eq.f32.partialorder %v7292_v10, %v6518_v19  ;;  %v1559_v10 = vsel %vm1558_vm15, %v1554_v60, inf }
 0x24a   :  { %v1517_v7 = vsel %vm1516_vm11, %v1512_v62, inf  ;;  %v7297_v62 = vld [vmem:[#allocation40_spill] sm:$0xff]  ;;  %v1582_v0 = vcvt.s32.f32 %v1580_v3 }
 0x24b   :  { %1532 = vmin.xlane.f32.xlu0 %v1531_v29  ;;  %1518 = vmin.xlane.f32.xlu1 %v1517_v7  ;;  %vm1586_vm1 = vcmp.eq.f32.partialorder %v7297_v62, %v6526_v26  ;;  %v7298_v29 = vld [vmem:[#allocation44_spill] sm:$0xff]  ;;  %v1540_v62 = vcvt.s32.f32 %v1538_v15 }
 0x24c   :  { %v6528_v12 = vpop.xlane.xlu0 %1108  ;;  %v1608_v7 = vand.u32 65535, %v7298_v29  ;;  %v7301_v29 = vld [vmem:[#allocation52_spill] sm:$0xff] }
 0x24d   :  { %vm1110_vm3 = vcmp.eq.f32.partialorder %v7296_v11, %v6528_v12  ;;  %v1587_v11 = vsel %vm1586_vm1, %v1582_v0, inf }
 0x24e   :  { %v1111_v9 = vsel %vm1110_vm3, %v1106_v61, inf  ;;  %v7300_v61 = vld [vmem:[#allocation50_spill] sm:$0xff]  ;;  %v1610_v28 = vcvt.s32.f32 %v1608_v7  ;;  %v1650_v7 = vand.u32 65535, %v6049_v32  ;;  %v7305_v32 = vld [vmem:[#allocation63_spill] sm:$0xff] }
 0x24f   :  { %1560 = vmin.xlane.f32.xlu0 %v1559_v10  ;;  %1112 = vmin.xlane.f32.xlu1 %v1111_v9  ;;  %v1132_v10 = vand.u32 65535, %v7300_v61 }
 0x250   :  { %v6536_v47 = vpop.xlane.xlu1 %1612  ;;  %v6538_v45 = vpop.xlane.xlu0 %1094 }
 0x251   :  { %7299 = vst [vmem:[#allocation33_spill] sm:$0xff] %v6536_v47  ;;  %vm1096_vm11 = vcmp.eq.f32.partialorder %v5982_v36, %v6538_v45  ;;  %vm1614_vm15 = vcmp.eq.f32.partialorder %v5980_v21, %v6536_v47  ;;  %v7302_v36 = vld [vmem:[#allocation54_spill] sm:$0xff]  ;;  %v7303_v21 = vld [vmem:[#allocation57_spill] sm:$0xff] }
 0x252   :  { %v1097_v60 = vsel %vm1096_vm11, %v1092_v30, inf  ;;  %v1615_v3 = vsel %vm1614_vm15, %v1610_v28, inf  ;;  %v1118_v0 = vand.u32 65535, %v7302_v36 }
 0x253   :  { %1588 = vmin.xlane.f32.xlu0 %v1587_v11  ;;  %1098 = vmin.xlane.f32.xlu1 %v1097_v60  ;;  %v1134_v11 = vcvt.s32.f32 %v1132_v10 }
 0x254   :  { %v6545_v9 = vpop.xlane.xlu0 %1542  ;;  %v1120_v61 = vcvt.s32.f32 %v1118_v0 }
 0x255   :  { %vm1544_vm3 = vcmp.eq.f32.partialorder %v7301_v29, %v6545_v9  ;;  %v7304_v29 = vld [vmem:[#allocation59_spill] sm:$0xff] }
 0x256   :  { %v1545_v4 = vsel %vm1544_vm3, %v1540_v62, inf  ;;  %v1566_v28 = vand.u32 65535, %v7304_v29 }
 0x257   :  { %1616 = vmin.xlane.f32.xlu0 %v1615_v3  ;;  %1546 = vmin.xlane.f32.xlu1 %v1545_v4  ;;  %v1652_v4 = vcvt.s32.f32 %v1650_v7 }
 0x258   :  { %v6550_v30 = vpop.xlane.xlu0 %1136  ;;  %v1568_v36 = vcvt.s32.f32 %v1566_v28  ;;  %v7308_v28 = vld [vmem:[#allocation66_spill] sm:$0xff] }
 0x259   :  { %vm1138_vm1 = vcmp.eq.f32.partialorder %v7303_v21, %v6550_v30 }
 0x25a   :  { %v1139_v60 = vsel %vm1138_vm1, %v1134_v11, inf  ;;  %v1160_v11 = vand.u32 65535, %v6053_v23 }
 0x25b   :  { %1140 = vmin.xlane.f32.xlu1 %v1139_v60 }
 0x25c   :  { %v6555_v15 = vpop.xlane.xlu0 %1122  ;;  %v1162_v29 = vcvt.s32.f32 %v1160_v11 }
 0x25d   :  { %vm1124_vm11 = vcmp.eq.f32.partialorder %v6046_v37, %v6555_v15  ;;  %v7306_v37 = vld [vmem:[#allocation67_spill] sm:$0xff] }
 0x25e   :  { %v1125_v62 = vsel %vm1124_vm11, %v1120_v61, inf  ;;  %v1692_v60 = vand.u32 65535, %v7306_v37 }
 0x25f   :  { %1126 = vmin.xlane.f32.xlu1 %v1125_v62  ;;  %v7307_v62 = vld [vmem:[#allocation64_spill] sm:$0xff] }
 0x260   :  { %v6560_v3 = vpop.xlane.xlu1 %1654  ;;  %v6562_v10 = vpop.xlane.xlu0 %1570  ;;  %v1146_v7 = vand.u32 65535, %v7307_v62 }
 0x261   :  { %vm1572_vm15 = vcmp.eq.f32.partialorder %v6075_v27, %v6562_v10  ;;  %vm1656_vm3 = vcmp.eq.f32.partialorder %v7305_v32, %v6560_v3  ;;  %v1272_v27 = vand.u32 65535, %v6114_v41  ;;  %v1720_v41 = vand.u32 65535, %v6141_v46 }
 0x262   :  { %v1657_v0 = vsel %vm1656_vm3, %v1652_v4, inf  ;;  %v1573_v21 = vsel %vm1572_vm15, %v1568_v36, inf  ;;  %v1694_v36 = vcvt.s32.f32 %v1692_v60  ;;  %v1148_v32 = vcvt.s32.f32 %v1146_v7  ;;  %v7309_v7 = vld [vmem:[#allocation71_spill] sm:$0xff] }
 0x263   :  { %1658 = vmin.xlane.f32.xlu0 %v1657_v0  ;;  %1574 = vmin.xlane.f32.xlu1 %v1573_v21  ;;  %v1594_v0 = vand.u32 65535, %v6099_v20  ;;  %v1274_v60 = vcvt.s32.f32 %v1272_v27  ;;  %v1188_v20 = vand.u32 65535, %v6118_v44  ;;  %v1300_v46 = vand.u32 65535, %v6163_v42 }
 0x264   :  { %v6570_v61 = vpop.xlane.xlu0 %1164  ;;  %v1722_v27 = vcvt.s32.f32 %v1720_v41  ;;  %v1636_v44 = vand.u32 65535, %v6145_v39  ;;  %v1748_v42 = vand.u32 65535, %v6183_v22  ;;  %v1328_v22 = vand.u32 65535, %v6202_v63 }
 0x265   :  { %vm1166_vm1 = vcmp.eq.f32.partialorder %v7308_v28, %v6570_v61  ;;  %v1596_v62 = vcvt.s32.f32 %v1594_v0  ;;  %v7311_v0 = vld [vmem:[#allocation73_spill] sm:$0xff]  ;;  %v1302_v41 = vcvt.s32.f32 %v1300_v46 }
 0x266   :  { %v1167_v23 = vsel %vm1166_vm1, %v1162_v29, inf  ;;  %v1750_v46 = vcvt.s32.f32 %v1748_v42  ;;  %v1330_v42 = vcvt.s32.f32 %v1328_v22 }
 0x267   :  { %1168 = vmin.xlane.f32.xlu1 %v1167_v23 }
 0x268   :  { %v6576_v47 = vpop.xlane.xlu1 %1696  ;;  %v6578_v4 = vpop.xlane.xlu0 %1150 }
 0x269   :  { %vm1152_vm11 = vcmp.eq.f32.partialorder %v6111_v40, %v6578_v4  ;;  %vm1698_vm15 = vcmp.eq.f32.partialorder %v6109_v34, %v6576_v47  ;;  %v7310_v40 = vld [vmem:[#allocation70_spill] sm:$0xff] }
 0x26a   :  { %v1699_v11 = vsel %vm1698_vm15, %v1694_v36, inf  ;;  %v1153_v21 = vsel %vm1152_vm11, %v1148_v32, inf  ;;  %v1190_v32 = vcvt.s32.f32 %v1188_v20  ;;  %v1638_v20 = vcvt.s32.f32 %v1636_v44 }
 0x26b   :  { %1700 = vmin.xlane.f32.xlu0 %v1699_v11  ;;  %1154 = vmin.xlane.f32.xlu1 %v1153_v21 }
 0x26c   :  { %v6586_v37 = vpop.xlane.xlu1 %1276  ;;  %v6588_v29 = vpop.xlane.xlu0 %1598 }
 0x26d   :  { %vm1600_vm3 = vcmp.eq.f32.partialorder %v7309_v7, %v6588_v29  ;;  %vm1278_vm1 = vcmp.eq.f32.partialorder %v7310_v40, %v6586_v37  ;;  %v7313_v7 = vld [vmem:[#allocation72_spill] sm:$0xff] }
 0x26e   :  { %v1279_v34 = vsel %vm1278_vm1, %v1274_v60, inf  ;;  %v1601_v28 = vsel %vm1600_vm3, %v1596_v62, inf  ;;  %v1174_v39 = vand.u32 65535, %v7313_v7 }
 0x26f   :  { %1280 = vmin.xlane.f32.xlu0 %v1279_v34  ;;  %1602 = vmin.xlane.f32.xlu1 %v1601_v28 }
 0x270   :  { %v6596_v23 = vpop.xlane.xlu1 %1724  ;;  %v6598_v36 = vpop.xlane.xlu0 %1192 }
 0x271   :  { %vm1194_vm11 = vcmp.eq.f32.partialorder %v6160_v5, %v6598_v36  ;;  %vm1726_vm15 = vcmp.eq.f32.partialorder %v7311_v0, %v6596_v23  ;;  %v7316_v0 = vld [vmem:[#allocation77_spill] sm:$0xff] }
 0x272   :  { %v1727_v11 = vsel %vm1726_vm15, %v1722_v27, inf  ;;  %v1195_v21 = vsel %vm1194_vm11, %v1190_v32, inf  ;;  %v1176_v27 = vcvt.s32.f32 %v1174_v39  ;;  %v7315_v32 = vld [vmem:[#allocation74_spill] sm:$0xff]  ;;  %v1776_v63 = vand.u32 65535, %v7316_v0  ;;  %v7319_v39 = vld [vmem:[#allocation80_spill] sm:$0xff] }
 0x273   :  { %1728 = vmin.xlane.f32.xlu0 %v1727_v11  ;;  %1196 = vmin.xlane.f32.xlu1 %v1195_v21  ;;  %v1622_v44 = vand.u32 65535, %v7315_v32  ;;  %v7321_v32 = vld [vmem:[#allocation76_spill] sm:$0xff] }
 0x274   :  { %v6606_v60 = vpop.xlane.xlu1 %1304  ;;  %v6608_v62 = vpop.xlane.xlu0 %1640  ;;  %v1778_v22 = vcvt.s32.f32 %v1776_v63 }
 0x275   :  { %7312 = vst [vmem:[#allocation35_spill] sm:$0xff] %v6606_v60  ;;  %vm1642_vm3 = vcmp.eq.f32.partialorder %v6180_v38, %v6608_v62  ;;  %vm1306_vm1 = vcmp.eq.f32.partialorder %v6178_v35, %v6606_v60 }
 0x276   :  { %v1307_v5 = vsel %vm1306_vm1, %v1302_v41, inf  ;;  %v1643_v40 = vsel %vm1642_vm3, %v1638_v20, inf  ;;  %v1624_v41 = vcvt.s32.f32 %v1622_v44  ;;  %v7318_v20 = vld [vmem:[#allocation75_spill] sm:$0xff]  ;;  %v1664_v44 = vand.u32 65535, %v7321_v32 }
 0x277   :  { %1308 = vmin.xlane.f32.xlu0 %v1307_v5  ;;  %1644 = vmin.xlane.f32.xlu1 %v1643_v40  ;;  %v1216_v7 = vand.u32 65535, %v7318_v20  ;;  %v1356_v5 = vand.u32 65535, %v7319_v39  ;;  %v7324_v20 = vld [vmem:[#allocation78_spill] sm:$0xff] }
 0x278   :  { %v6616_v34 = vpop.xlane.xlu1 %1752  ;;  %v6618_v28 = vpop.xlane.xlu0 %1178 }
 0x279   :  { %7314 = vst [vmem:[#allocation25_spill] sm:$0xff] %v6616_v34  ;;  %vm1180_vm11 = vcmp.eq.f32.partialorder %v6190_v48, %v6618_v28  ;;  %vm1754_vm15 = vcmp.eq.f32.partialorder %v6199_v43, %v6616_v34  ;;  %v1358_v63 = vcvt.s32.f32 %v1356_v5  ;;  %v1384_v5 = vand.u32 65535, %v6276_v52  ;;  %v7374_v34 = vld [vmem:[#allocation18_spill] sm:$0xff] }
 0x27a   :  { %v1755_v35 = vsel %vm1754_vm15, %v1750_v46, inf  ;;  %v1181_v38 = vsel %vm1180_vm11, %v1176_v27, inf  ;;  %v1218_v27 = vcvt.s32.f32 %v1216_v7  ;;  %v1202_v7 = vand.u32 65535, %v7324_v20 }
 0x27b   :  { %1756 = vmin.xlane.f32.xlu0 %v1755_v35  ;;  %1182 = vmin.xlane.f32.xlu1 %v1181_v38  ;;  %v1804_v38 = vand.u32 65535, %v6259_v49  ;;  %v1832_v52 = vand.u32 65535, %v6295_v53 }
 0x27c   :  { %v6626_v11 = vpop.xlane.xlu1 %1332  ;;  %v6628_v21 = vpop.xlane.xlu0 %1626  ;;  %v1204_v32 = vcvt.s32.f32 %v1202_v7 }
 0x27d   :  { %7317 = vst [vmem:[#allocation27_spill] sm:$0xff] %v6626_v11  ;;  %vm1628_vm3 = vcmp.eq.f32.partialorder %v6211_v50, %v6628_v21  ;;  %vm1334_vm1 = vcmp.eq.f32.partialorder %v6218_v31, %v6626_v11  ;;  %v7322_v50 = vld [vmem:[#allocation79_spill] sm:$0xff] }
 0x27e   :  { %v1335_v48 = vsel %vm1334_vm1, %v1330_v42, inf  ;;  %v1629_v43 = vsel %vm1628_vm3, %v1624_v41, inf  ;;  %v1666_v41 = vcvt.s32.f32 %v1664_v44  ;;  %v1244_v44 = vand.u32 65535, %v6244_v51 }
 0x27f   :  { %1336 = vmin.xlane.f32.xlu0 %v1335_v48  ;;  %1630 = vmin.xlane.f32.xlu1 %v1629_v43  ;;  %v7325_v48 = vld [vmem:[#allocation82_spill] sm:$0xff] }
 0x280   :  { %v6636_v40 = vpop.xlane.xlu1 %1780  ;;  %v6638_v46 = vpop.xlane.xlu0 %1220  ;;  %v1246_v7 = vcvt.s32.f32 %v1244_v44 }
 0x281   :  { %7320 = vst [vmem:[#allocation36_spill] sm:$0xff] %v6636_v40  ;;  %vm1222_vm11 = vcmp.eq.f32.partialorder %v6233_v2, %v6638_v46  ;;  %vm1782_vm15 = vcmp.eq.f32.partialorder %v7322_v50, %v6636_v40  ;;  %v7326_v2 = vld [vmem:[#allocation81_spill] sm:$0xff] }
 0x282   :  { %v1783_v31 = vsel %vm1782_vm15, %v1778_v22, inf  ;;  %v1223_v35 = vsel %vm1222_vm11, %v1218_v27, inf  ;;  %v1806_v27 = vcvt.s32.f32 %v1804_v38  ;;  %v7328_v50 = vld [vmem:[#allocation85_spill] sm:$0xff]  ;;  %v1386_v38 = vcvt.s32.f32 %v1384_v5 }
 0x283   :  { %1784 = vmin.xlane.f32.xlu0 %v1783_v31  ;;  %1224 = vmin.xlane.f32.xlu1 %v1223_v35  ;;  %v7329_v31 = vld [vmem:[#allocation84_spill] sm:$0xff]  ;;  %v1834_v5 = vcvt.s32.f32 %v1832_v52  ;;  %v7369_v40 = vld [vmem:[#allocation21_spill] sm:$0xff] }
 0x284   :  { %v6646_v0 = vpop.xlane.xlu1 %1360  ;;  %v6648_v42 = vpop.xlane.xlu0 %1668 }
 0x285   :  { %7323 = vst [vmem:[#allocation37_spill] sm:$0xff] %v6646_v0  ;;  %vm1362_vm3 = vcmp.eq.f32.partialorder %v7325_v48, %v6646_v0  ;;  %vm1670_vm1 = vcmp.eq.f32.partialorder %v7326_v2, %v6648_v42  ;;  %v7331_v48 = vld [vmem:[#allocation83_spill] sm:$0xff] }
 0x286   :  { %v1363_v43 = vsel %vm1362_vm3, %v1358_v63, inf  ;;  %v1671_v39 = vsel %vm1670_vm1, %v1666_v41, inf  ;;  %v1230_v51 = vand.u32 65535, %v7331_v48  ;;  %v7332_v2 = vld [vmem:[#allocation87_spill] sm:$0xff] }
 0x287   :  { %1364 = vmin.xlane.f32.xlu0 %v1363_v43  ;;  %1672 = vmin.xlane.f32.xlu1 %v1671_v39 }
 0x288   :  { %v6655_v22 = vpop.xlane.xlu1 %1808  ;;  %v6657_v49 = vpop.xlane.xlu0 %1206  ;;  %v1232_v44 = vcvt.s32.f32 %v1230_v51 }
 0x289   :  { %7327 = vst [vmem:[#allocation29_spill] sm:$0xff] %v6655_v22  ;;  %vm1810_vm11 = vcmp.eq.f32.partialorder %v7328_v50, %v6655_v22  ;;  %vm1208_vm15 = vcmp.eq.f32.partialorder %v7329_v31, %v6657_v49  ;;  %v7334_v50 = vld [vmem:[#allocation86_spill] sm:$0xff]  ;;  %v7367_v22 = vld [vmem:[#allocation9_spill] sm:$0xff] }
 0x28a   :  { %v1811_v35 = vsel %vm1810_vm11, %v1806_v27, inf  ;;  %v1209_v63 = vsel %vm1208_vm15, %v1204_v32, inf  ;;  %v1678_v53 = vand.u32 65535, %v7334_v50  ;;  %v7336_v31 = vld [vmem:[#allocation90_spill] sm:$0xff] }
 0x28b   :  { %1812 = vmin.xlane.f32.xlu0 %v1811_v35  ;;  %1210 = vmin.xlane.f32.xlu1 %v1209_v63  ;;  %v1412_v35 = vand.u32 65535, %v7336_v31 }
 0x28c   :  { %v6665_v41 = vpop.xlane.xlu1 %1388  ;;  %v6667_v20 = vpop.xlane.xlu0 %1248  ;;  %v1680_v48 = vcvt.s32.f32 %v1678_v53  ;;  %v7339_v53 = vld [vmem:[#allocation14_spill] sm:$0xff] }
 0x28d   :  { %7330 = vst [vmem:[#allocation32_spill] sm:$0xff] %v6665_v41  ;;  %vm1390_vm3 = vcmp.eq.f32.partialorder %v6297_v56, %v6665_v41  ;;  %vm1250_vm1 = vcmp.eq.f32.partialorder %v7332_v2, %v6667_v20  ;;  %v7335_v56 = vld [vmem:[#allocation88_spill] sm:$0xff]  ;;  %v7337_v2 = vld [vmem:[#allocation89_spill] sm:$0xff] }
 0x28e   :  { %v1391_v43 = vsel %vm1390_vm3, %v1386_v38, inf  ;;  %v1251_v39 = vsel %vm1250_vm1, %v1246_v7, inf  ;;  %v1258_v52 = vand.u32 65535, %v7337_v2 }
 0x28f   :  { %1392 = vmin.xlane.f32.xlu0 %v1391_v43  ;;  %1252 = vmin.xlane.f32.xlu1 %v1251_v39  ;;  %v1846_v43 = vand.u32 65535, %v6327_v33  ;;  %v7341_v33 = vld [vmem:[#allocation4_spill] sm:$0xff] }
 0x290   :  { %v6675_v27 = vpop.xlane.xlu1 %1836  ;;  %v6677_v32 = vpop.xlane.xlu0 %1234  ;;  %v1260_v50 = vcvt.s32.f32 %v1258_v52  ;;  %v7343_v52 = vld [vmem:[#allocation5_spill] sm:$0xff] }
 0x291   :  { %7333 = vst [vmem:[#allocation39_spill] sm:$0xff] %v6675_v27  ;;  %vm1838_vm11 = vcmp.eq.f32.partialorder %v6314_v6, %v6675_v27  ;;  %vm1236_vm15 = vcmp.eq.f32.partialorder %v7335_v56, %v6677_v32  ;;  %v1414_v6 = vcvt.s32.f32 %v1412_v35  ;;  %v1706_v56 = vand.u32 65535, %v7339_v53 }
 0x292   :  { %v1839_v63 = vsel %vm1838_vm11, %v1834_v5, inf  ;;  %v1237_v38 = vsel %vm1236_vm15, %v1232_v44, inf }
 0x293   :  { %1840 = vmin.xlane.f32.xlu0 %v1839_v63  ;;  %1238 = vmin.xlane.f32.xlu1 %v1237_v38  ;;  %v1708_v38 = vcvt.s32.f32 %v1706_v56 }
 0x294   :  { %v6685_v7 = vpop.xlane.xlu0 %1682  ;;  %v6688_v51 = vpop.xlane.xlu1 %1416 }
 0x295   :  { %7338 = vst [vmem:[#allocation41_spill] sm:$0xff] %v6688_v51  ;;  %vm1684_vm3 = vcmp.eq.f32.partialorder %v6324_v8, %v6685_v7  ;;  %vm1418_vm1 = vcmp.eq.f32.partialorder %v6333_v59, %v6688_v51  ;;  %v1848_v8 = vcvt.s32.f32 %v1846_v43  ;;  %v7344_v43 = vld [vmem:[#allocation92_spill] sm:$0xff] }
 0x296   :  { %v1685_v39 = vsel %vm1684_vm3, %v1680_v48, inf  ;;  %v1419_v5 = vsel %vm1418_vm1, %v1414_v6, inf  ;;  %v7342_v48 = vld [vmem:[#allocation91_spill] sm:$0xff] }
 0x297   :  { %1686 = vmin.xlane.f32.xlu1 %v1685_v39  ;;  %1420 = vmin.xlane.f32.xlu0 %v1419_v5  ;;  %v1286_v2 = vand.u32 65535, %v7342_v48  ;;  %v1734_v5 = vand.u32 65535, %v7344_v43  ;;  %v989_v43 = vcvt.f32.s32 %v6395_v14 }
 0x298   :  { %v6695_v44 = vpop.xlane.xlu0 %1262  ;;  %v6698_v31 = vpop.xlane.xlu1 %1850 }
 0x299   :  { %7340 = vst [vmem:[#allocation34_spill] sm:$0xff] %v6698_v31  ;;  %vm1264_vm11 = vcmp.eq.f32.partialorder %v6342_v18, %v6695_v44  ;;  %vm1852_vm15 = vcmp.eq.f32.partialorder %v7341_v33, %v6698_v31  ;;  %v1288_v18 = vcvt.s32.f32 %v1286_v2  ;;  %v1736_v56 = vcvt.s32.f32 %v1734_v5 }
 0x29a   :  { %v1265_v35 = vsel %vm1264_vm11, %v1260_v50, inf  ;;  %v1853_v59 = vsel %vm1852_vm15, %v1848_v8, inf  ;;  %v7346_v8 = vld [vmem:[#allocation6_spill] sm:$0xff]  ;;  %v990_v51 = vshll.u32 %v989_v43, 16 }
 0x29b   :  { %1266 = vmin.xlane.f32.xlu1 %v1265_v35  ;;  %1854 = vmin.xlane.f32.xlu0 %v1853_v59  ;;  %v1314_v33 = vand.u32 65535, %v7346_v8  ;;  %v1003_v35 = vcvt.f32.s32 %v6381_v58  ;;  %v7347_v59 = vld [vmem:[#allocation7_spill] sm:$0xff] }
 0x29c   :  { %v6704_v63 = vpop.xlane.xlu0 %1710 }
 0x29d   :  { %vm1712_vm3 = vcmp.eq.f32.partialorder %v7343_v52, %v6704_v63  ;;  %v1316_v52 = vcvt.s32.f32 %v1314_v33 }
 0x29e   :  { %v1713_v6 = vsel %vm1712_vm3, %v1708_v38, inf }
 0x29f   :  { %1714 = vmin.xlane.f32.xlu1 %v1713_v6  ;;  %v7349_v6 = vld [vmem:[#allocation93_spill] sm:$0xff] }
 0x2a0   :  { %v6709_v39 = vpop.xlane.xlu0 %1290 }
 0x2a1   :  { %vm1292_vm1 = vcmp.eq.f32.partialorder %v6361_v24, %v6709_v39  ;;  %v1762_v24 = vand.u32 65535, %v7349_v6  ;;  %v7352_v6 = vld [vmem:[#allocation8_spill] sm:$0xff] }
 0x2a2   :  { %v1293_v50 = vsel %vm1292_vm1, %v1288_v18, inf  ;;  %v1004_v18 = vshll.u32 %v1003_v35, 16 }
 0x2a3   :  { %1294 = vmin.xlane.f32.xlu1 %v1293_v50 }
 0x2a4   :  { %v6714_v53 = vpop.xlane.xlu0 %1738 }
 0x2a5   :  { %7345 = vst [vmem:[#allocation38_spill] sm:$0xff] %v6714_v53  ;;  %vm1740_vm11 = vcmp.eq.f32.partialorder %v7347_v59, %v6714_v53 }
 0x2a6   :  { %v1741_v38 = vsel %vm1740_vm11, %v1736_v56, inf  ;;  %v1764_v56 = vcvt.s32.f32 %v1762_v24  ;;  %v7354_v24 = vld [vmem:[#allocation46_spill] sm:$0xff] }
 0x2a7   :  { %1742 = vmin.xlane.f32.xlu1 %v1741_v38  ;;  %v1342_v38 = vand.u32 65535, %v6389_v54 }
 0x2a8   :  { %v1001_v48 = vpop.xlane.xlu1 %1000  ;;  %v6720_v2 = vpop.xlane.xlu0 %1318 }
 0x2a9   :  { %7348 = vst [vmem:[#allocation42_spill] sm:$0xff] %v6720_v2  ;;  %v1002_v50 = vcvt.f32.s32 %v1001_v48  ;;  %vm1320_vm15 = vcmp.eq.f32.partialorder %v6383_v55, %v6720_v2 }
 0x2aa   :  { %v1321_v5 = vsel %vm1320_vm15, %v1316_v52, inf  ;;  %v1344_v52 = vcvt.s32.f32 %v1342_v38  ;;  %v7356_v38 = vld [vmem:[#allocation17_spill] sm:$0xff] }
 0x2ab   :  { %v1005_v58 = vadd.s32 %v1004_v18, %v1002_v50  ;;  %1322 = vmin.xlane.f32.xlu1 %v1321_v5  ;;  %v1790_v18 = vand.u32 65535, %v7352_v6  ;;  %v7353_v50 = vld [vmem:[#allocation45_spill] sm:$0xff] }
 0x2ac   :  { %v987_v8 = vpop.xlane.xlu1 %986  ;;  %v6726_v59 = vpop.xlane.xlu0 %1766 }
 0x2ad   :  { %7350 = vst [vmem:[#allocation43_spill] sm:$0xff] %v6726_v59  ;;  %v988_v33 = vcvt.f32.s32 %v987_v8  ;;  %vm1768_vm3 = vcmp.eq.f32.partialorder %v6397_v57, %v6726_v59  ;;  %v2303_v5 = vrot.slane %v1005_v58, %v7353_v50 }
 0x2ae   :  { %v1769_v35 = vsel %vm1768_vm3, %v1764_v56, inf  ;;  %v1792_v56 = vcvt.s32.f32 %v1790_v18  ;;  %v7359_v18 = vld [vmem:[#allocation11_spill] sm:$0xff] }
 0x2af   :  { %v991_v14 = vadd.s32 %v990_v51, %v988_v33  ;;  %1770 = vmin.xlane.f32.xlu1 %v1769_v35  ;;  %v1031_v51 = vcvt.f32.s32 %v6423_v16  ;;  %v1370_v33 = vand.u32 65535, %v7356_v38  ;;  %v1017_v35 = vcvt.f32.s32 %v6437_v1  ;;  %v7358_v16 = vld [vmem:[#allocation10_spill] sm:$0xff] }
 0x2b0   :  { %v6731_v48 = vpop.xlane.xlu1 %1434  ;;  %v6733_v55 = vpop.xlane.xlu0 %1346 }
 0x2b1   :  { %7351 = vst [vmem:[#allocation40_spill] sm:$0xff] %v6733_v55  ;;  %v2299_v31 = vrot.slane %v991_v14, %v7354_v24  ;;  %vm1348_vm1 = vcmp.eq.f32.partialorder %v6411_v13, %v6733_v55  ;;  %v1032_v13 = vshll.u32 %v1031_v51, 16  ;;  %v1372_v6 = vcvt.s32.f32 %v1370_v33  ;;  %v7361_v51 = vld [vmem:[#allocation48_spill] sm:$0xff]  ;;  %v7363_v33 = vld [vmem:[#allocation47_spill] sm:$0xff] }
 0x2b2   :  { %v1349_v54 = vsel %vm1348_vm1, %v1344_v52, inf  ;;  %v1436_v11 = vcvt.f32.s32 %v6731_v48 }
 0x2b3   :  { %v2304_v57 = vsel %vm1951_vm8, %v2303_v5, %v2299_v31  ;;  %1350 = vmin.xlane.f32.xlu1 %v1349_v54  ;;  %v1818_v5 = vand.u32 65535, %v7358_v16  ;;  %v1018_v54 = vshll.u32 %v1017_v35, 16 }
 0x2b4   :  { %v1029_v43 = vpop.xlane.xlu1 %1028  ;;  %v6742_v8 = vpop.xlane.xlu0 %1794 }
 0x2b5   :  { %7355 = vst [vmem:[#allocation44_spill] sm:$0xff] %v6742_v8  ;;  %vm1796_vm11 = vcmp.eq.f32.partialorder %v6425_v25, %v6742_v8  ;;  %v1030_v58 = vcvt.f32.s32 %v1029_v43  ;;  %v7362_v8 = vld [vmem:[#allocation13_spill] sm:$0xff] }
 0x2b6   :  { %v1797_v14 = vsel %vm1796_vm11, %v1792_v56, inf  ;;  %v1820_v56 = vcvt.s32.f32 %v1818_v5 }
 0x2b7   :  { %1798 = vmin.xlane.f32.xlu1 %v1797_v14  ;;  %v1033_v38 = vadd.s32 %v1032_v13, %v1030_v58  ;;  %v7365_v13 = vld [vmem:[#allocation12_spill] sm:$0xff] }
 0x2b8   :  { %v1015_v52 = vpop.xlane.xlu1 %1014  ;;  %v6748_v31 = vpop.xlane.xlu0 %1374 }
 0x2b9   :  { %7357 = vst [vmem:[#allocation50_spill] sm:$0xff] %v6748_v31  ;;  %v1016_v27 = vcvt.f32.s32 %v1015_v52  ;;  %vm1376_vm15 = vcmp.eq.f32.partialorder %v7359_v18, %v6748_v31  ;;  %v2313_v16 = vrot.slane %v1033_v38, %v7363_v33  ;;  %v7364_v18 = vld [vmem:[#allocation22_spill] sm:$0xff] }
 0x2ba   :  { %v1377_v1 = vsel %vm1376_vm15, %v1372_v6, inf  ;;  %v1398_v58 = vand.u32 65535, %v7364_v18  ;;  %v7368_v38 = vld [vmem:[#allocation26_spill] sm:$0xff]  ;;  %vm7390_vm15 = vcmask 851712  }
 0x2bb   :  { %v1019_v41 = vadd.s32 %v1018_v54, %v1016_v27  ;;  %1378 = vmin.xlane.f32.xlu1 %v1377_v1  ;;  %v1059_v27 = vcvt.f32.s32 %v7365_v13  ;;  %v7366_v1 = vld [vmem:[#allocation15_spill] sm:$0xff]  ;;  %v7371_v13 = vld [vmem:[#allocation20_spill] sm:$0xff] }
 0x2bc   :  { %v1463_v25 = vpop.xlane.xlu1 %1462  ;;  %v6753_v43 = vpop.xlane.xlu0 %1822  ;;  %v1860_v55 = vand.u32 65535, %v7371_v13  ;;  %v1493_v13 = vcvt.f32.s32 %v7374_v34 }
 0x2bd   :  { %7360 = vst [vmem:[#allocation52_spill] sm:$0xff] %v6753_v43  ;;  %v2308_v14 = vrot.slane %v1019_v41, %v7361_v51  ;;  %vm1824_vm3 = vcmp.eq.f32.partialorder %v7362_v8, %v6753_v43  ;;  %v1045_v41 = vcvt.f32.s32 %v7366_v1  ;;  %v1437_v8 = vcvt.f32.s32 %v7367_v22 }
 0x2be   :  { %v1825_v35 = vsel %vm1824_vm3, %v1820_v56, inf  ;;  %v1400_v43 = vcvt.s32.f32 %v1398_v58  ;;  %v1451_v56 = vcvt.f32.s32 %v7368_v38  ;;  %v7373_v38 = vld [vmem:[#allocation24_spill] sm:$0xff]  ;;  %v1862_v48 = vcvt.s32.f32 %v1860_v55 }
 0x2bf   :  { %v2309_v52 = vsel %vm1958_vm9, %v2308_v14, %v2304_v57  ;;  %1826 = vmin.xlane.f32.xlu1 %v1825_v35  ;;  %v1465_v57 = vcvt.f32.s32 %v7369_v40  ;;  %v1060_v14 = vshll.u32 %v1059_v27, 16  ;;  %v1046_v0 = vshll.u32 %v1045_v41, 16 }
 0x2c0   :  { %v1057_v6 = vpop.xlane.xlu1 %1056  ;;  %v6762_v54 = vpop.xlane.xlu0 %1864  ;;  %v2314_v5 = vsel %vm1965_vm10, %v2313_v16, %v2309_v52  ;;  %v7372_v52 = vld [vmem:[#allocation28_spill] sm:$0xff]  ;;  %v1438_v1 = vshll.u32 %v1437_v8, 16  ;;  %v1452_v27 = vshll.u32 %v1451_v56, 16  ;;  %v7377_v8 = vld [vmem:[#allocation51_spill] sm:$0xff]  ;;  %v7378_v56 = vld [vmem:[#allocation30_spill] sm:$0xff]  ;;  %v1494_v55 = vshll.u32 %v1493_v13, 16 }
 0x2c1   :  { %v1058_v31 = vcvt.f32.s32 %v1057_v6  ;;  %v1464_v6 = vcvt.f32.s32 %v1463_v25  ;;  %vm1866_vm11 = vcmp.eq.f32.partialorder %v7373_v38, %v6762_v54  ;;  %v1466_v59 = vshll.u32 %v1465_v57, 16 }
 0x2c2   :  { %v1439_v53 = vadd.s32 %v1438_v1, %v1436_v11  ;;  %v1507_v57 = vcvt.f32.s32 %v7378_v56  ;;  %v7380_v1 = vld [vmem:[#allocation23_spill] sm:$0xff]  ;;  %vm7391_vm3 = vcmask 917312  }
 0x2c3   :  { %v1061_v22 = vadd.s32 %v1060_v14, %v1058_v31 }
 0x2c4   :  { %v1043_v35 = vpop.xlane.xlu1 %1042  ;;  %v6769_v18 = vpop.xlane.xlu0 %1402 }
 0x2c5   :  { %7370 = vst [vmem:[#allocation54_spill] sm:$0xff] %v6769_v18  ;;  %v1044_v16 = vcvt.f32.s32 %v1043_v35  ;;  %vm1404_vm1 = vcmp.eq.f32.partialorder %v7372_v52, %v6769_v18  ;;  %v7375_v35 = vld [vmem:[#allocation16_spill] sm:$0xff]  ;;  %v7376_v52 = vld [vmem:[#allocation49_spill] sm:$0xff]  ;;  %v2323_v14 = vrot.slane %v1061_v22, %v7377_v8 }
 0x2c6   :  { %v1405_v58 = vsel %vm1404_vm1, %v1400_v43, inf  ;;  %v1479_v60 = vcvt.f32.s32 %v7375_v35  ;;  %v1467_v43 = vadd.s32 %v1466_v59, %v1464_v6  ;;  %vm7392_vm1 = vmmov %vm7390_vm15 }
 0x2c7   :  { %v1047_v40 = vadd.s32 %v1046_v0, %v1044_v16  ;;  %1406 = vmin.xlane.f32.xlu1 %v1405_v58  ;;  %v1867_v0 = vsel %vm1866_vm11, %v1862_v48, inf  ;;  %v7379_v58 = vld [vmem:[#allocation31_spill] sm:$0xff]  ;;  %vm7396_vm11 = vcmask 982912  }
 0x2c8   :  { %v1491_v41 = vpop.xlane.xlu1 %1490  ;;  %v1449_v2 = vpop.xlane.xlu0 %1448  ;;  %v1087_v11 = vcvt.f32.s32 %v7379_v58  ;;  %v1480_v22 = vshll.u32 %v1479_v60, 16  ;;  %v2466_v35 = vrot.slane %v1467_v43, %v7361_v51  ;;  %v1521_v60 = vcvt.f32.s32 %v6518_v19 }
 0x2c9   :  { %v2318_v25 = vrot.slane %v1047_v40, %v7376_v52  ;;  %v1450_v31 = vcvt.f32.s32 %v1449_v2  ;;  %v1492_v18 = vcvt.f32.s32 %v1491_v41  ;;  %v1073_v40 = vcvt.f32.s32 %v7380_v1 }
 0x2ca   :  { %v2457_v41 = vrot.slane %v1439_v53, %v7354_v24 }
 0x2cb   :  { %v2319_v34 = vsel %vm1972_vm12, %v2318_v25, %v2314_v5  ;;  %v1453_v16 = vadd.s32 %v1452_v27, %v1450_v31  ;;  %1868 = vmin.xlane.f32.xlu1 %v1867_v0  ;;  %v1495_v5 = vadd.s32 %v1494_v55, %v1492_v18  ;;  %v1508_v31 = vshll.u32 %v1507_v57, 16 }
 0x2cc   :  { %v1085_v2 = vpop.xlane.xlu1 %1084  ;;  %v1477_v59 = vpop.xlane.xlu0 %1476  ;;  %v2324_v6 = vsel %vm1979_vm13, %v2323_v14, %v2319_v34  ;;  %v1088_v0 = vshll.u32 %v1087_v11, 16  ;;  %v1074_v56 = vshll.u32 %v1073_v40, 16  ;;  %v1522_v40 = vshll.u32 %v1521_v60, 16 }
 0x2cd   :  { %v2461_v38 = vrot.slane %v1453_v16, %v7353_v50  ;;  %v1478_v48 = vcvt.f32.s32 %v1477_v59  ;;  %v1086_v27 = vcvt.f32.s32 %v1085_v2  ;;  %v2476_v43 = vrot.slane %v1495_v5, %v7376_v52 }
 0x2cf   :  { %v2462_v13 = vsel %vm1951_vm8, %v2461_v38, %v2457_v41  ;;  %v1481_v25 = vadd.s32 %v1480_v22, %v1478_v48  ;;  %v1089_v18 = vadd.s32 %v1088_v0, %v1086_v27  ;;  %v7381_v22 = vld [vmem:[#allocation53_spill] sm:$0xff]  ;;  %v7382_v48 = vld [vmem:[#allocation55_spill] sm:$0xff] }
 0x2d0   :  { %v2467_v58 = vsel %vm1958_vm9, %v2466_v35, %v2462_v13  ;;  %v1071_v1 = vpop.xlane.xlu1 %1070  ;;  %v1505_v14 = vpop.xlane.xlu0 %1504  ;;  %v7383_v27 = vld [vmem:[#allocation19_spill] sm:$0xff] }
 0x2d1   :  { %v2471_v53 = vrot.slane %v1481_v25, %v7363_v33  ;;  %v1072_v34 = vcvt.f32.s32 %v1071_v1  ;;  %v1506_v16 = vcvt.f32.s32 %v1505_v14  ;;  %v2333_v19 = vrot.slane %v1089_v18, %v7382_v48 }
 0x2d2   :  { %v1535_v0 = vcvt.f32.s32 %v7383_v27  ;;  %v1101_v1 = vcvt.f32.s32 %v6538_v45 }
 0x2d3   :  { %v2472_v55 = vsel %vm1965_vm10, %v2471_v53, %v2467_v58  ;;  %v1075_v2 = vadd.s32 %v1074_v56, %v1072_v34  ;;  %v1509_v59 = vadd.s32 %v1508_v31, %v1506_v16  ;;  %v1115_v56 = vcvt.f32.s32 %v6528_v12 }
 0x2d4   :  { %v2477_v57 = vsel %vm1972_vm12, %v2476_v43, %v2472_v55  ;;  %v1519_v11 = vpop.xlane.xlu1 %1518  ;;  %v1533_v5 = vpop.xlane.xlu0 %1532  ;;  %v1102_v55 = vshll.u32 %v1101_v1, 16  ;;  %v1129_v1 = vcvt.f32.s32 %v6555_v15 }
 0x2d5   :  { %v2328_v41 = vrot.slane %v1075_v2, %v7381_v22  ;;  %v1520_v38 = vcvt.f32.s32 %v1519_v11  ;;  %v2481_v35 = vrot.slane %v1509_v59, %v7377_v8  ;;  %v1534_v53 = vcvt.f32.s32 %v1533_v5 }
 0x2d6   :  { %v1116_v43 = vshll.u32 %v1115_v56, 16  ;;  %v1549_v2 = vcvt.f32.s32 %v6545_v9 }
 0x2d7   :  { %v2329_v13 = vsel %vm1986_vm14, %v2328_v41, %v2324_v6  ;;  %v1523_v25 = vadd.s32 %v1522_v40, %v1520_v38  ;;  %v2482_v60 = vsel %vm1979_vm13, %v2481_v35, %v2477_v57  ;;  %v1536_v6 = vshll.u32 %v1535_v0, 16 }
 0x2d8   :  { %v1113_v31 = vpop.xlane.xlu1 %1112  ;;  %v2334_v58 = vsel %vm1993_vm0, %v2333_v19, %v2329_v13  ;;  %v1550_v45 = vshll.u32 %v1549_v2, 16  ;;  %v1143_v38 = vcvt.f32.s32 %v6550_v30  ;;  %v7384_v19 = vld [vmem:[#allocation56_spill] sm:$0xff]  ;;  %v1577_v2 = vcvt.f32.s32 %v6562_v10 }
 0x2d9   :  { %v2486_v14 = vrot.slane %v1523_v25, %v7381_v22  ;;  %v1114_v34 = vcvt.f32.s32 %v1113_v31  ;;  %v1537_v59 = vadd.s32 %v1536_v6, %v1534_v53  ;;  %v7385_v25 = vld [vmem:[#allocation58_spill] sm:$0xff]  ;;  %v1563_v53 = vcvt.f32.s32 %v6516_v17 }
 0x2da   :  { %v1144_v31 = vshll.u32 %v1143_v38, 16  ;;  %v7386_v38 = vld [vmem:[#allocation61_spill] sm:$0xff] }
 0x2db   :  { %v2487_v16 = vsel %vm1986_vm14, %v2486_v14, %v2482_v60  ;;  %v1117_v11 = vadd.s32 %v1116_v43, %v1114_v34  ;;  %v2491_v13 = vrot.slane %v1537_v59, %v7382_v48  ;;  %v1561_v14 = vpop.xlane.xlu0 %1560  ;;  %v1564_v59 = vshll.u32 %v1563_v53, 16 }
 0x2dc   :  { %v1099_v18 = vpop.xlane.xlu1 %1098 }
 0x2dd   :  { %v1100_v12 = vcvt.f32.s32 %v1099_v18  ;;  %v2343_v5 = vrot.slane %v1117_v11, %v7385_v25  ;;  %v2492_v34 = vsel %vm1993_vm0, %v2491_v13, %v2487_v16  ;;  %v1562_v18 = vcvt.f32.s32 %v1561_v14 }
 0x2df   :  { %v1103_v40 = vadd.s32 %v1102_v55, %v1100_v12  ;;  %v1130_v55 = vshll.u32 %v1129_v1, 16  ;;  %v1565_v15 = vadd.s32 %v1564_v59, %v1562_v18  ;;  %v1589_v16 = vpop.xlane.xlu0 %1588  ;;  %v1157_v1 = vcvt.f32.s32 %v6578_v4 }
 0x2e0   :  { %v1547_v41 = vpop.xlane.xlu1 %1546 }
 0x2e1   :  { %v2338_v57 = vrot.slane %v1103_v40, %v7384_v19  ;;  %v1548_v35 = vcvt.f32.s32 %v1547_v41  ;;  %v1578_v41 = vshll.u32 %v1577_v2, 16 }
 0x2e3   :  { %v2339_v27 = vsel %vm2000_vm2, %v2338_v57, %v2334_v58  ;;  %v1551_v0 = vadd.s32 %v1550_v45, %v1548_v35  ;;  %v1171_v45 = vcvt.f32.s32 %v6570_v61  ;;  %v7387_v35 = vld [vmem:[#allocation60_spill] sm:$0xff] }
 0x2e4   :  { %v1141_v56 = vpop.xlane.xlu1 %1140  ;;  %v2344_v9 = vsel %vm2007_vm4, %v2343_v5, %v2339_v27 }
 0x2e5   :  { %v2496_v60 = vrot.slane %v1551_v0, %v7384_v19  ;;  %v1142_v30 = vcvt.f32.s32 %v1141_v56  ;;  %v2501_v0 = vrot.slane %v1565_v15, %v7385_v25 }
 0x2e7   :  { %v2497_v6 = vsel %vm2000_vm2, %v2496_v60, %v2492_v34  ;;  %v1145_v43 = vadd.s32 %v1144_v31, %v1142_v30  ;;  %v1172_v31 = vshll.u32 %v1171_v45, 16  ;;  %v1591_v60 = vcvt.f32.s32 %v6526_v26 }
 0x2e8   :  { %v1127_v58 = vpop.xlane.xlu1 %1126  ;;  %v2502_v30 = vsel %vm2007_vm4, %v2501_v0, %v2497_v6  ;;  %v1199_v26 = vcvt.f32.s32 %v6598_v36  ;;  %v7388_v6 = vld [vmem:[#allocation62_spill] sm:$0xff] }
 0x2e9   :  { %v1128_v12 = vcvt.f32.s32 %v1127_v58  ;;  %v2353_v13 = vrot.slane %v1145_v43, %v7387_v35  ;;  %v1617_v43 = vpop.xlane.xlu0 %1616  ;;  %v1158_v58 = vshll.u32 %v1157_v1, 16 }
 0x2eb   :  { %v1131_v11 = vadd.s32 %v1130_v55, %v1128_v12  ;;  %v1605_v55 = vcvt.f32.s32 %v6588_v29  ;;  %v1592_v12 = vshll.u32 %v1591_v60, 16 }
 0x2ec   :  { %v1575_v40 = vpop.xlane.xlu1 %1574 }
 0x2ed   :  { %v2348_v17 = vrot.slane %v1131_v11, %v7386_v38  ;;  %v1576_v57 = vcvt.f32.s32 %v1575_v40  ;;  %v6835_v11 = vpop.xlane.xlu0 %1658  ;;  %v1606_v40 = vshll.u32 %v1605_v55, 16 }
 0x2ef   :  { %v2349_v5 = vsel %vm2014_vm6, %v2348_v17, %v2344_v9  ;;  %v1579_v27 = vadd.s32 %v1578_v41, %v1576_v57  ;;  %v1590_v9 = vcvt.f32.s32 %v1589_v16  ;;  %v7389_v17 = vld [vmem:[#allocation65_spill] sm:$0xff] }
 0x2f0   :  { %v1169_v10 = vpop.xlane.xlu1 %1168  ;;  %v2354_v56 = vsel %vm2021_vm7, %v2353_v13, %v2349_v5 }
 0x2f1   :  { %v2506_v14 = vrot.slane %v1579_v27, %v7386_v38  ;;  %v1170_v61 = vcvt.f32.s32 %v1169_v10  ;;  %v1593_v4 = vadd.s32 %v1592_v12, %v1590_v9  ;;  %v1200_v10 = vshll.u32 %v1199_v26, 16 }
 0x2f2   :  { %v1618_v12 = vcvt.f32.s32 %v1617_v43 }
 0x2f3   :  { %v2507_v53 = vsel %vm2014_vm6, %v2506_v14, %v2502_v30  ;;  %v1173_v34 = vadd.s32 %v1172_v31, %v1170_v61  ;;  %v2511_v29 = vrot.slane %v1593_v4, %v7387_v35  ;;  %v1647_v31 = vcvt.f32.s32 %v6608_v62 }
 0x2f4   :  { %v1155_v18 = vpop.xlane.xlu1 %1154  ;;  %v6842_v5 = vpop.xlane.xlu0 %1700  ;;  %v1633_v4 = vcvt.f32.s32 %v6628_v21 }
 0x2f5   :  { %v1156_v2 = vcvt.f32.s32 %v1155_v18  ;;  %v2363_v57 = vrot.slane %v1173_v34, %v7389_v17  ;;  %v2512_v14 = vsel %vm2021_vm7, %v2511_v29, %v2507_v53  ;;  %v1648_v30 = vshll.u32 %v1647_v31, 16  ;;  %v7393_v18 = vld [vmem:[#allocation33_spill] sm:$0xff] }
 0x2f6   :  { %v1185_v34 = vcvt.f32.s32 %v6618_v28  ;;  %v7394_v28 = vld [vmem:[#allocation68_spill] sm:$0xff]  ;;  %v7395_v29 = vld [vmem:[#allocation69_spill] sm:$0xff] }
 0x2f7   :  { %v1159_v59 = vadd.s32 %v1158_v58, %v1156_v2  ;;  %v1619_v58 = vcvt.f32.s32 %v7393_v18  ;;  %v1213_v18 = vcvt.f32.s32 %v6657_v49 }
 0x2f8   :  { %v1603_v15 = vpop.xlane.xlu1 %1602  ;;  %v6851_v55 = vpop.xlane.xlu0 %1280 }
 0x2f9   :  { %v2358_v41 = vrot.slane %v1159_v59, %v7388_v6  ;;  %v1604_v45 = vcvt.f32.s32 %v1603_v15  ;;  %v1186_v59 = vshll.u32 %v1185_v34, 16  ;;  %v1620_v53 = vshll.u32 %v1619_v58, 16 }
 0x2fa   :  { %v1227_v34 = vcvt.f32.s32 %v6638_v46  ;;  %v1255_v46 = vcvt.f32.s32 %v6667_v20 }
 0x2fb   :  { %v2359_v16 = vsel %vm7390_vm15, %v2358_v41, %v2354_v56  ;;  %v1607_v13 = vadd.s32 %v1606_v40, %v1604_v45  ;;  %v1621_v26 = vadd.s32 %v1620_v53, %v1618_v12  ;;  %vm7397_vm15 = vmmov %vm7391_vm3 }
 0x2fc   :  { %v1197_v27 = vpop.xlane.xlu1 %1196  ;;  %v2364_v0 = vsel %vm7391_vm3, %v2363_v57, %v2359_v16  ;;  %v6854_v41 = vpop.xlane.xlu0 %1728  ;;  %v1634_v57 = vshll.u32 %v1633_v4, 16  ;;  %vm7398_vm3 = vmmov %vm7396_vm11  ;;  %v1228_v12 = vshll.u32 %v1227_v34, 16 }
 0x2fd   :  { %v2516_v36 = vrot.slane %v1607_v13, %v7388_v6  ;;  %v1198_v1 = vcvt.f32.s32 %v1197_v27  ;;  %v2521_v31 = vrot.slane %v1621_v26, %v7389_v17  ;;  %v1241_v26 = vcvt.f32.s32 %v6677_v32 }
 0x2fe   :  { %v1689_v32 = vcvt.f32.s32 %v6685_v7 }
 0x2ff   :  { %v2517_v61 = vsel %vm7392_vm1, %v2516_v36, %v2512_v14  ;;  %v1201_v60 = vadd.s32 %v1200_v10, %v1198_v1 }
 0x300   :  { %v1645_v56 = vpop.xlane.xlu1 %1644 }
 0x301   :  { %v1646_v9 = vcvt.f32.s32 %v1645_v56  ;;  %v2373_v27 = vrot.slane %v1201_v60, %v7395_v29  ;;  %v6865_v56 = vpop.xlane.xlu0 %1308 }
 0x303   :  { %v1649_v2 = vadd.s32 %v1648_v30, %v1646_v9  ;;  %v2522_v30 = vsel %vm7397_vm15, %v2521_v31, %v2517_v61  ;;  %v1675_v61 = vcvt.f32.s32 %v6648_v42  ;;  %v1256_v31 = vshll.u32 %v1255_v46, 16 }
 0x304   :  { %v1183_v62 = vpop.xlane.xlu1 %1182  ;;  %v1660_v42 = vcvt.f32.s32 %v6835_v11  ;;  %v1703_v11 = vcvt.f32.s32 %v6576_v47  ;;  %v1702_v46 = vcvt.f32.s32 %v6842_v5 }
 0x305   :  { %v1184_v15 = vcvt.f32.s32 %v1183_v62  ;;  %v2531_v14 = vrot.slane %v1649_v2, %v7395_v29  ;;  %v6874_v62 = vpop.xlane.xlu0 %1756  ;;  %v1214_v2 = vshll.u32 %v1213_v18, 16 }
 0x307   :  { %v1187_v40 = vadd.s32 %v1186_v59, %v1184_v15 }
 0x308   :  { %v1631_v45 = vpop.xlane.xlu1 %1630 }
 0x309   :  { %v2368_v16 = vrot.slane %v1187_v40, %v7394_v28  ;;  %v1632_v13 = vcvt.f32.s32 %v1631_v45 }
 0x30b   :  { %v2369_v10 = vsel %vm7396_vm11, %v2368_v16, %v2364_v0  ;;  %v1635_v43 = vadd.s32 %v1634_v57, %v1632_v13  ;;  %v1661_v57 = vcvt.f32.s32 %v6560_v3  ;;  %v6882_v16 = vpop.xlane.xlu0 %1336 }
 0x30c   :  { %v6861_v21 = vsel %vm2049_vm5, %v2373_v27, %v2369_v10  ;;  %v1225_v36 = vpop.xlane.xlu1 %1224 }
 0x30d   :  { %v2526_v1 = vrot.slane %v1635_v43, %v7394_v28  ;;  %v1226_v58 = vcvt.f32.s32 %v1225_v36  ;;  %v1676_v43 = vshll.u32 %v1675_v61, 16  ;;  %v1242_v36 = vshll.u32 %v1241_v26, 16 }
 0x30f   :  { %v2527_v60 = vsel %vm7398_vm3, %v2526_v1, %v2522_v30  ;;  %v1229_v4 = vadd.s32 %v1228_v12, %v1226_v58  ;;  %v6887_v18 = vpop.xlane.xlu0 %1784  ;;  %v1690_v58 = vshll.u32 %v1689_v32, 16  ;;  %v1269_v12 = vcvt.f32.s32 %v6695_v44 }
 0x310   :  { %v6871_v0 = vsel %vm2049_vm5, %v2531_v14, %v2527_v60  ;;  %v1673_v9 = vpop.xlane.xlu1 %1672  ;;  %v1662_v14 = vshll.u32 %v1661_v57, 16  ;;  %v1704_v57 = vshll.u32 %v1703_v11, 16 }
 0x311   :  { %v2382_v45 = vrot.slane %v1229_v4, %v7353_v50  ;;  %v1674_v13 = vcvt.f32.s32 %v1673_v9  ;;  %v1270_v44 = vshll.u32 %v1269_v12, 16 }
 0x312   :  { %v1663_v3 = vadd.s32 %v1662_v14, %v1660_v42  ;;  %v1705_v5 = vadd.s32 %v1704_v57, %v1702_v46  ;;  %v7401_v46 = vld [vmem:[#allocation42_spill] sm:$0xff] }
 0x313   :  { %v1677_v30 = vadd.s32 %v1676_v43, %v1674_v13  ;;  %v1282_v43 = vcvt.f32.s32 %v6851_v55 }
 0x314   :  { %v1211_v59 = vpop.xlane.xlu1 %1210  ;;  %v2536_v61 = vrot.slane %v1663_v3, %v7354_v24  ;;  %v2550_v14 = vrot.slane %v1705_v5, %v7363_v33 }
 0x315   :  { %v1212_v15 = vcvt.f32.s32 %v1211_v59  ;;  %v2540_v4 = vrot.slane %v1677_v30, %v7353_v50  ;;  %v1283_v50 = vcvt.f32.s32 %v6586_v37  ;;  %v1731_v37 = vcvt.f32.s32 %v6596_v23 }
 0x317   :  { %v1215_v53 = vadd.s32 %v1214_v2, %v1212_v15  ;;  %v2541_v13 = vsel %vm1951_vm8, %v2540_v4, %v2536_v61 }
 0x318   :  { %v1253_v40 = vpop.xlane.xlu1 %1252 }
 0x319   :  { %v2378_v49 = vrot.slane %v1215_v53, %v7354_v24  ;;  %v1254_v27 = vcvt.f32.s32 %v1253_v40 }
 0x31b   :  { %v2383_v10 = vsel %vm1951_vm8, %v2382_v45, %v2378_v49  ;;  %v1257_v34 = vadd.s32 %v1256_v31, %v1254_v27  ;;  %v1717_v45 = vcvt.f32.s32 %v6704_v63  ;;  %v6902_v27 = vpop.xlane.xlu0 %1364  ;;  %v1297_v63 = vcvt.f32.s32 %v6709_v39  ;;  %vm7415_vm8 = vmmov %vm7392_vm1 }
 0x31c   :  { %v1239_v20 = vpop.xlane.xlu1 %1238 }
 0x31d   :  { %v1240_v1 = vcvt.f32.s32 %v1239_v20  ;;  %v2392_v7 = vrot.slane %v1257_v34, %v7363_v33  ;;  %v1718_v42 = vshll.u32 %v1717_v45, 16  ;;  %v1730_v34 = vcvt.f32.s32 %v6854_v41  ;;  %v7402_v45 = vld [vmem:[#allocation25_spill] sm:$0xff] }
 0x31e   :  { %v1298_v3 = vshll.u32 %v1297_v63, 16 }
 0x31f   :  { %v1243_v60 = vadd.s32 %v1242_v36, %v1240_v1  ;;  %v1284_v36 = vshll.u32 %v1283_v50, 16 }
 0x320   :  { %v1687_v9 = vpop.xlane.xlu1 %1686 }
 0x321   :  { %v2387_v59 = vrot.slane %v1243_v60, %v7361_v51  ;;  %v1688_v2 = vcvt.f32.s32 %v1687_v9  ;;  %v1285_v30 = vadd.s32 %v1284_v36, %v1282_v43  ;;  %v6912_v60 = vpop.xlane.xlu0 %1812  ;;  %v7399_v9 = vld [vmem:[#allocation38_spill] sm:$0xff]  ;;  %v7404_v36 = vld [vmem:[#allocation27_spill] sm:$0xff] }
 0x322   :  { %v1745_v39 = vcvt.f32.s32 %v7399_v9 }
 0x323   :  { %v2388_v15 = vsel %vm1958_vm9, %v2387_v59, %v2383_v10  ;;  %v1691_v53 = vadd.s32 %v1690_v58, %v1688_v2  ;;  %v1732_v59 = vshll.u32 %v1731_v37, 16  ;;  %v7400_v2 = vld [vmem:[#allocation35_spill] sm:$0xff]  ;;  %v1339_v37 = vcvt.f32.s32 %v7404_v36 }
 0x324   :  { %v2393_v40 = vsel %vm1965_vm10, %v2392_v7, %v2388_v15  ;;  %v1267_v26 = vpop.xlane.xlu1 %1266  ;;  %v1311_v23 = vcvt.f32.s32 %v7400_v2  ;;  %v2402_v7 = vrot.slane %v1285_v30, %v7377_v8  ;;  %v1310_v15 = vcvt.f32.s32 %v6865_v56 }
 0x325   :  { %v2545_v49 = vrot.slane %v1691_v53, %v7361_v51  ;;  %v1268_v47 = vcvt.f32.s32 %v1267_v26  ;;  %v1733_v41 = vadd.s32 %v1732_v59, %v1730_v34  ;;  %v1746_v61 = vshll.u32 %v1745_v39, 16  ;;  %v7406_v39 = vld [vmem:[#allocation40_spill] sm:$0xff] }
 0x326   :  { %v1340_v2 = vshll.u32 %v1339_v37, 16 }
 0x327   :  { %v2546_v24 = vsel %vm1958_vm9, %v2545_v49, %v2541_v13  ;;  %v1271_v10 = vadd.s32 %v1270_v44, %v1268_v47  ;;  %v1312_v44 = vshll.u32 %v1311_v23, 16  ;;  %v1759_v49 = vcvt.f32.s32 %v7402_v45  ;;  %v6924_v47 = vpop.xlane.xlu0 %1392  ;;  %v7407_v23 = vld [vmem:[#allocation36_spill] sm:$0xff]  ;;  %vm7417_vm9 = vmmov %vm7397_vm15 }
 0x328   :  { %v1715_v31 = vpop.xlane.xlu1 %1714  ;;  %v2551_v11 = vsel %vm1965_vm10, %v2550_v14, %v2546_v24  ;;  %v2560_v24 = vrot.slane %v1733_v41, %v7377_v8  ;;  %vm7419_vm10 = vmmov %vm7392_vm1 }
 0x329   :  { %v2397_v51 = vrot.slane %v1271_v10, %v7376_v52  ;;  %v1716_v20 = vcvt.f32.s32 %v1715_v31  ;;  %v1313_v56 = vadd.s32 %v1312_v44, %v1310_v15  ;;  %v1758_v10 = vcvt.f32.s32 %v6874_v62  ;;  %v7403_v31 = vld [vmem:[#allocation43_spill] sm:$0xff]  ;;  %v7408_v15 = vld [vmem:[#allocation29_spill] sm:$0xff]  ;;  %v7409_v44 = vld [vmem:[#allocation44_spill] sm:$0xff] }
 0x32a   :  { %v1801_v45 = vcvt.f32.s32 %v7409_v44 }
 0x32b   :  { %v2398_v32 = vsel %vm1972_vm12, %v2397_v51, %v2393_v40  ;;  %v1719_v1 = vadd.s32 %v1718_v42, %v1716_v20  ;;  %v1325_v40 = vcvt.f32.s32 %v7401_v46  ;;  %v1773_v42 = vcvt.f32.s32 %v7403_v31 }
 0x32c   :  { %v1295_v55 = vpop.xlane.xlu1 %1294  ;;  %v2403_v57 = vsel %vm1979_vm13, %v2402_v7, %v2398_v32  ;;  %v1760_v20 = vshll.u32 %v1759_v49, 16  ;;  %v2412_v34 = vrot.slane %v1313_v56, %v7382_v48 }
 0x32d   :  { %v2555_v58 = vrot.slane %v1719_v1, %v7376_v52  ;;  %v1296_v12 = vcvt.f32.s32 %v1295_v55  ;;  %v1326_v43 = vshll.u32 %v1325_v40, 16  ;;  %v7405_v1 = vld [vmem:[#allocation37_spill] sm:$0xff]  ;;  %v1338_v55 = vcvt.f32.s32 %v6882_v16 }
 0x32e   :  { %v1367_v14 = vcvt.f32.s32 %v7405_v1  ;;  %v1761_v62 = vadd.s32 %v1760_v20, %v1758_v10  ;;  %v1786_v40 = vcvt.f32.s32 %v6887_v18  ;;  %v7410_v10 = vld [vmem:[#allocation32_spill] sm:$0xff]  ;;  %v1394_v1 = vcvt.f32.s32 %v6924_v47 }
 0x32f   :  { %v2556_v4 = vsel %vm1972_vm12, %v2555_v58, %v2551_v11  ;;  %v1299_v33 = vadd.s32 %v1298_v3, %v1296_v12  ;;  %v6938_v3 = vpop.xlane.xlu0 %1840  ;;  %v1353_v58 = vcvt.f32.s32 %v7406_v39  ;;  %v1787_v11 = vcvt.f32.s32 %v7407_v23  ;;  %v7414_v23 = vld [vmem:[#allocation52_spill] sm:$0xff]  ;;  %vm7420_vm12 = vmmov %vm7417_vm9 }
 0x330   :  { %v1743_v53 = vpop.xlane.xlu1 %1742  ;;  %v2561_v32 = vsel %vm1979_vm13, %v2560_v24, %v2556_v4  ;;  %v1366_v4 = vcvt.f32.s32 %v6902_v27  ;;  %v1368_v7 = vshll.u32 %v1367_v14, 16  ;;  %v1341_v46 = vadd.s32 %v1340_v2, %v1338_v55  ;;  %vm7421_vm13 = vmmov %vm7398_vm3 }
 0x331   :  { %v2407_v52 = vrot.slane %v1299_v33, %v7381_v22  ;;  %v1744_v26 = vcvt.f32.s32 %v1743_v53  ;;  %v1815_v53 = vcvt.f32.s32 %v7408_v15 }
 0x332   :  { %v2422_v31 = vrot.slane %v1341_v46, %v7385_v25 }
 0x333   :  { %v2408_v50 = vsel %vm1986_vm14, %v2407_v52, %v2403_v57  ;;  %v1747_v13 = vadd.s32 %v1746_v61, %v1744_v26  ;;  %v2570_v61 = vrot.slane %v1761_v62, %v7382_v48  ;;  %v1354_v26 = vshll.u32 %v1353_v58, 16  ;;  %v6952_v24 = vpop.xlane.xlu0 %1420  ;;  %v7412_v62 = vld [vmem:[#allocation39_spill] sm:$0xff] }
 0x334   :  { %v1323_v5 = vpop.xlane.xlu1 %1322  ;;  %v2413_v33 = vsel %vm1993_vm0, %v2412_v34, %v2408_v50  ;;  %v1788_v57 = vshll.u32 %v1787_v11, 16  ;;  %v1369_v50 = vadd.s32 %v1368_v7, %v1366_v4  ;;  %v1395_v48 = vcvt.f32.s32 %v7410_v10 }
 0x335   :  { %v2565_v63 = vrot.slane %v1747_v13, %v7381_v22  ;;  %v1324_v51 = vcvt.f32.s32 %v1323_v5  ;;  %v1774_v22 = vshll.u32 %v1773_v42, 16  ;;  %v1814_v13 = vcvt.f32.s32 %v6912_v60 }
 0x336   :  { %v1789_v42 = vadd.s32 %v1788_v57, %v1786_v40  ;;  %v2432_v37 = vrot.slane %v1369_v50, %v7387_v35  ;;  %v1843_v55 = vcvt.f32.s32 %v7412_v62  ;;  %v1829_v11 = vcvt.f32.s32 %v7414_v23  ;;  %v7416_v57 = vld [vmem:[#allocation41_spill] sm:$0xff] }
 0x337   :  { %v2566_v30 = vsel %vm1986_vm14, %v2565_v63, %v2561_v32  ;;  %v1327_v8 = vadd.s32 %v1326_v43, %v1324_v51  ;;  %v1816_v43 = vshll.u32 %v1815_v53, 16  ;;  %v7411_v51 = vld [vmem:[#allocation50_spill] sm:$0xff]  ;;  %v1855_v58 = vpop.xlane.xlu0 %1854  ;;  %v1423_v50 = vcvt.f32.s32 %v7416_v57  ;;  %vm7422_vm14 = vmmov %vm7398_vm3 }
 0x338   :  { %v1771_v9 = vpop.xlane.xlu1 %1770  ;;  %v2571_v56 = vsel %vm1993_vm0, %v2570_v61, %v2566_v30  ;;  %v1381_v20 = vcvt.f32.s32 %v7411_v51  ;;  %v1396_v30 = vshll.u32 %v1395_v48, 16  ;;  %v2580_v39 = vrot.slane %v1789_v42, %v7385_v25 }
 0x339   :  { %v2417_v12 = vrot.slane %v1327_v8, %v7384_v19  ;;  %v1772_v59 = vcvt.f32.s32 %v1771_v9  ;;  %v1817_v32 = vadd.s32 %v1816_v43, %v1814_v13  ;;  %v7413_v9 = vld [vmem:[#allocation34_spill] sm:$0xff]  ;;  %v1856_v15 = vcvt.f32.s32 %v1855_v58 }
 0x33a   :  { %v1382_v2 = vshll.u32 %v1381_v20, 16  ;;  %v1397_v7 = vadd.s32 %v1396_v30, %v1394_v1  ;;  %v1844_v61 = vshll.u32 %v1843_v55, 16  ;;  %v1424_v42 = vshll.u32 %v1423_v50, 16 }
 0x33b   :  { %v2418_v41 = vsel %vm2000_vm2, %v2417_v12, %v2413_v33  ;;  %v1775_v16 = vadd.s32 %v1774_v22, %v1772_v59  ;;  %v1857_v22 = vcvt.f32.s32 %v7413_v9  ;;  %v2590_v33 = vrot.slane %v1817_v32, %v7387_v35 }
 0x33c   :  { %v1351_v52 = vpop.xlane.xlu1 %1350  ;;  %v2423_v14 = vsel %vm2007_vm4, %v2422_v31, %v2418_v41  ;;  %v1842_v41 = vcvt.f32.s32 %v6938_v3  ;;  %v2442_v35 = vrot.slane %v1397_v7, %v7389_v17  ;;  %v1871_v51 = vcvt.f32.s32 %v6762_v54 }
 0x33d   :  { %v2575_v49 = vrot.slane %v1775_v16, %v7384_v19  ;;  %v1352_v27 = vcvt.f32.s32 %v1351_v52  ;;  %v1802_v19 = vshll.u32 %v1801_v45, 16  ;;  %v1858_v52 = vshll.u32 %v1857_v22, 16 }
 0x33e   :  { %v1845_v45 = vadd.s32 %v1844_v61, %v1842_v41  ;;  %vm7423_vm0 = vcmask 1041409  }
 0x33f   :  { %v2576_v5 = vsel %vm2000_vm2, %v2575_v49, %v2571_v56  ;;  %v1355_v18 = vadd.s32 %v1354_v26, %v1352_v27  ;;  %v1830_v26 = vshll.u32 %v1829_v11, 16  ;;  %v1859_v49 = vadd.s32 %v1858_v52, %v1856_v15  ;;  %v7418_v56 = vld [vmem:[#allocation54_spill] sm:$0xff] }
 0x340   :  { %v1799_v63 = vpop.xlane.xlu1 %1798  ;;  %v2581_v16 = vsel %vm2007_vm4, %v2580_v39, %v2576_v5  ;;  %v1409_v10 = vcvt.f32.s32 %v7418_v56  ;;  %v2600_v5 = vrot.slane %v1845_v45, %v7389_v17  ;;  %v1872_v17 = vshll.u32 %v1871_v51, 16 }
 0x341   :  { %v2427_v36 = vrot.slane %v1355_v18, %v7386_v38  ;;  %v1800_v60 = vcvt.f32.s32 %v1799_v63  ;;  %v1422_v18 = vcvt.f32.s32 %v6952_v24  ;;  %v2605_v43 = vrot.slane %v1859_v49, %v7394_v28 }
 0x342   :  { %v1410_v20 = vshll.u32 %v1409_v10, 16  ;;  %vm7424_vm2 = vcmask 1042434   ;;  %vm7425_vm4 = vcmask 1043459  }
 0x343   :  { %v2428_v8 = vsel %vm2014_vm6, %v2427_v36, %v2423_v14  ;;  %v1803_v34 = vadd.s32 %v1802_v19, %v1800_v60 }
 0x344   :  { %v1379_v12 = vpop.xlane.xlu1 %1378  ;;  %v2433_v59 = vsel %vm2021_vm7, %v2432_v37, %v2428_v8  ;;  %v1425_v37 = vadd.s32 %v1424_v42, %v1422_v18 }
 0x345   :  { %v2585_v47 = vrot.slane %v1803_v34, %v7386_v38  ;;  %v1380_v4 = vcvt.f32.s32 %v1379_v12 }
 0x346   :  { %v2452_v14 = vrot.slane %v1425_v37, %v7395_v29 }
 0x347   :  { %v2586_v25 = vsel %vm2014_vm6, %v2585_v47, %v2581_v16  ;;  %v1383_v53 = vadd.s32 %v1382_v2, %v1380_v4 }
 0x348   :  { %v1827_v46 = vpop.xlane.xlu1 %1826  ;;  %v2591_v40 = vsel %vm2021_vm7, %v2590_v33, %v2586_v25 }
 0x349   :  { %v2437_v38 = vrot.slane %v1383_v53, %v7388_v6  ;;  %v1828_v44 = vcvt.f32.s32 %v1827_v46 }
 0x34b   :  { %v2438_v3 = vsel %vm7415_vm8, %v2437_v38, %v2433_v59  ;;  %v1831_v27 = vadd.s32 %v1830_v26, %v1828_v44 }
 0x34c   :  { %v2443_v13 = vsel %vm7417_vm9, %v2442_v35, %v2438_v3 }
 0x34d   :  { %v2595_v48 = vrot.slane %v1831_v27, %v7388_v6 }
 0x34f   :  { %v2596_v31 = vsel %vm7419_vm10, %v2595_v48, %v2591_v40 }
 0x350   :  { %v2601_v63 = vsel %vm7420_vm12, %v2600_v5, %v2596_v31  ;;  %v1407_v19 = vpop.xlane.xlu1 %1406 }
 0x351   :  { %v1408_v36 = vcvt.f32.s32 %v1407_v19  ;;  %v2606_v60 = vsel %vm7421_vm13, %v2605_v43, %v2601_v63 }
 0x353   :  { %v1411_v6 = vadd.s32 %v1410_v20, %v1408_v36 }
 0x354   :  { %v1869_v32 = vpop.xlane.xlu1 %1868 }
 0x355   :  { %v2447_v24 = vrot.slane %v1411_v6, %v7394_v28  ;;  %v1870_v1 = vcvt.f32.s32 %v1869_v32 }
 0x357   :  { %v2448_v30 = vsel %vm7422_vm14, %v2447_v24, %v2443_v13  ;;  %v1873_v8 = vadd.s32 %v1872_v17, %v1870_v1 }
 0x358   :  { %v2453_v34 = vsel %vm2049_vm5, %v2452_v14, %v2448_v30 }
 0x359   :  { %v2612_v54 = vsel %vm7423_vm0, %v2453_v34, %v6861_v21  ;;  %v2610_v62 = vrot.slane %v1873_v8, %v7395_v29 }
 0x35a   :  { %v2613_v55 = vsel %vm7424_vm2, %v6871_v0, %v2612_v54 }
 0x35b   :  { %v2611_v9 = vsel %vm2049_vm5, %v2610_v62, %v2606_v60 }
 0x35c   :  { %v2614_v28 = vsel %vm7425_vm4, %v2611_v9, %v2613_v55 }
 0x35d   :  { %2615 = vst [vmem:[#allocation3] sm:$0xf] %v2614_v28 }
 0x364   :  { %v4874_v22 = vld [vmem:[#allocation3] sm:$0xf] }
 0x365   :  { %4875 = vst [vmem:[%s7005_s2] sm:$0xf] %v4874_v22 }

</bundles_post_ra>
